<compile_context>
chip_gen: v7x
topology: tpu7x:2x2x1
jax: 0.10.0
libtpu: 0.0.40
codegen_flags: <defaults>
</compile_context>

<pallas_src>
import functools
from typing import NamedTuple

import jax
import jax.numpy as jnp
from jax.experimental import pallas as pl
from jax.experimental.pallas import tpu as pltpu

LRELU_SLOPE = 0.1
MATMUL_DTYPE = jnp.bfloat16   # kernel-input dtype; accumulation/epilogues stay f32


def _round_up(x, m):
    return (x + m - 1) // m * m


# ---------------------------------------------------------------------------
# Pallas kernels (single-pass matmuls with fused epilogues; no K reduction loop)
# ---------------------------------------------------------------------------

def _stft_mag_kernel(f_ref, b_ref, o_ref, *, fp):
    """o = sqrt(re^2 + im^2) with acc = frames @ [cos | sin] fused basis."""
    acc = jnp.dot(f_ref[...], b_ref[...], preferred_element_type=jnp.float32)
    re = acc[:, :fp]          # lane-aligned slices (fp is a multiple of 128)
    im = acc[:, fp:]
    # NOTE: exact sqrt(re^2+im^2) == torch.norm(..., p=2, dim=-1); no epsilon added
    # to match the reference forward bit-for-bit in spirit (forward-only kernel).
    o_ref[...] = jnp.sqrt(re * re + im * im).astype(o_ref.dtype)


def _conv_bias_act_kernel(w_ref, p_ref, o_ref, *, slope):
    """o = leaky_relu(W_aug @ patches^T); bias rides in the matmul (ones-row)."""
    acc = jnp.dot(w_ref[...], p_ref[...], preferred_element_type=jnp.float32)
    if slope is not None:
        acc = jnp.where(acc >= 0, acc, slope * acc)
    o_ref[...] = acc.astype(o_ref.dtype)


def stft_mag(frames, basis, fp, *, tm_max=512):
    """frames: (M, n_fft) f32; basis: (n_fft, 2*fp) bf16 (window folded in)."""
    M, K = frames.shape
    tm = min(tm_max, _round_up(M, 16))
    Mp = _round_up(M, tm)
    f = jnp.pad(frames.astype(MATMUL_DTYPE), ((0, Mp - M), (0, 0)))
    out = pl.pallas_call(
        functools.partial(_stft_mag_kernel, fp=fp),
        out_shape=jax.ShapeDtypeStruct((Mp, fp), jnp.float32),
        grid_spec=pltpu.PrefetchScalarGridSpec(
            num_scalar_prefetch=0,
            grid=(Mp // tm,),                      # single "parallel" axis over M
            in_specs=[
                pl.BlockSpec((tm, K), lambda i: (i, 0)),       # K fits one tile
                pl.BlockSpec((K, 2 * fp), lambda i: (0, 0)),   # constant basis
            ],
            out_specs=pl.BlockSpec((tm, fp), lambda i: (i, 0)),
        ),
        compiler_params=pltpu.CompilerParams(dimension_semantics=("parallel",)),
    )(f, basis)
    return out[:M]


def conv_matmul(wm, patches_t, slope, *, tn_max=512):
    """wm: (coutp, kp) prepared weight (bias folded at column K); patches_t: (K, N)."""
    coutp, kp = wm.shape
    K, N = patches_t.shape
    tn = min(tn_max, _round_up(N, 128))
    Np = _round_up(N, tn)
    pt = jnp.concatenate(
        [patches_t.astype(MATMUL_DTYPE), jnp.ones((1, N), MATMUL_DTYPE)], axis=0)
    pt = jnp.pad(pt, ((0, kp - K - 1), (0, Np - N)))
    out = pl.pallas_call(
        functools.partial(_conv_bias_act_kernel, slope=slope),
        out_shape=jax.ShapeDtypeStruct((coutp, Np), jnp.float32),
        grid_spec=pltpu.PrefetchScalarGridSpec(
            num_scalar_prefetch=0,
            grid=(Np // tn,),                      # single "parallel" axis over N
            in_specs=[
                pl.BlockSpec((coutp, kp), lambda j: (0, 0)),   # tiny constant LHS
                pl.BlockSpec((kp, tn), lambda j: (0, j)),
            ],
            out_specs=pl.BlockSpec((coutp, tn), lambda j: (0, j)),  # lane-dense out
        ),
        compiler_params=pltpu.CompilerParams(dimension_semantics=("parallel",)),
    )(wm, pt)
    return out[:, :N]


# ---------------------------------------------------------------------------
# Static config + prepared (pre-padded) constant operands
# ---------------------------------------------------------------------------

class ConvCfg(NamedTuple):
    cout: int
    cin: int
    kh: int
    kw: int
    sh: int
    sw: int
    ph: int
    pw: int


class ResCfg(NamedTuple):
    n_fft: int
    hop: int
    win_length: int
    f_bins: int
    fp: int
    layers: tuple  # tuple[ConvCfg, ...]


def _prep_conv_weight(key, cout, cin, kh, kw):
    """Deterministic effective weight, zero-padded to (coutp, Kp) with bias folded."""
    k_w, k_b = jax.random.split(key)
    w = 0.1 * jax.random.normal(k_w, (cout, cin, kh, kw), jnp.float32)
    b = 0.01 * jax.random.normal(k_b, (cout,), jnp.float32)
    K = cin * kh * kw
    kp = _round_up(K + 1, 16)          # +1 bias column; 16 keeps bf16 sublanes happy
    coutp = _round_up(cout, 8)
    wm = jnp.zeros((coutp, kp), jnp.float32)
    wm = wm.at[:cout, :K].set(w.reshape(cout, K))
    wm = wm.at[:cout, K].set(b)        # matched by the ones-row appended to patches
    return wm.astype(MATMUL_DTYPE)


def _make_basis(n_fft, win_length, fp):
    """Fused [cos | -sin] rDFT basis with torch.stft's default rect window folded in."""
    F = n_fft // 2 + 1
    n = jnp.arange(n_fft, dtype=jnp.float32)[:, None]
    f = jnp.arange(F, dtype=jnp.float32)[None, :]
    ang = 2.0 * jnp.pi * n * f / n_fft
    left = (n_fft - win_length) // 2
    win = jnp.zeros((n_fft,), jnp.float32).at[left:left + win_length].set(1.0)
    basis = jnp.zeros((n_fft, 2 * fp), jnp.float32)
    basis = basis.at[:, :F].set(jnp.cos(ang))
    basis = basis.at[:, fp:fp + F].set(-jnp.sin(ang))
    basis = basis * win[:, None]
    return basis.astype(MATMUL_DTYPE)


def build_discriminator_r(key, d_mult, resolution):
    n_fft, hop_length, win_length = resolution
    C = int(32 * d_mult)
    F = n_fft // 2 + 1
    fp = _round_up(F, 128)
    #            cin, cout, kh, kw, sh, sw, ph, pw
    conv_specs = [(1,   C,   3,  9,  1,  1,  1,  4),
                  (C,   C,   3,  9,  1,  2,  1,  4),
                  (C,   C,   3,  9,  1,  2,  1,  4),
                  (C,   C,   3,  9,  1,  2,  1,  4),
                  (C,   C,   3,  3,  1,  1,  1,  1),
                  (C,   1,   3,  3,  1,  1,  1,  1)]   # conv_post
    keys = jax.random.split(key, len(conv_specs))
    layers, weights = [], []
    for k, (cin, cout, kh, kw, sh, sw, ph, pw) in zip(keys, conv_specs):
        layers.append(ConvCfg(cout, cin, kh, kw, sh, sw, ph, pw))
        weights.append(_prep_conv_weight(k, cout, cin, kh, kw))
    cfg = ResCfg(n_fft, hop_length, win_length, F, fp, tuple(layers))
    arrays = {"basis": _make_basis(n_fft, win_length, fp), "w": weights}
    return cfg, arrays


# ---------------------------------------------------------------------------
# Forward (glue is plain JAX under jit; heavy math goes through Pallas kernels)
# ---------------------------------------------------------------------------

def spectrogram_cbhw(x, basis, cfg: ResCfg):
    """torch.stft magnitude (center=False, rect window) -> (Cin=1, B, F, T)."""
    pad = (cfg.n_fft - cfg.hop) // 2
    xpad = jnp.pad(x[:, 0, :], ((0, 0), (pad, pad)), mode="reflect")   # (B, Lp)
    B, Lp = xpad.shape
    T = (Lp - cfg.n_fft) // cfg.hop + 1
    idx = (jnp.arange(T) * cfg.hop)[:, None] + jnp.arange(cfg.n_fft)[None, :]
    frames = xpad[:, idx].reshape(B * T, cfg.n_fft)       # (B*T, n_fft)
    mag = stft_mag(frames, basis, cfg.fp)                 # (B*T, Fp)
    mag = mag[:, :cfg.f_bins].reshape(B, T, cfg.f_bins)
    return jnp.transpose(mag, (0, 2, 1))[None]            # (1, B, F, T)


def conv2d_cbhw(x, wm, cfg: ConvCfg, slope):
    """PyTorch-semantics Conv2d on (Cin, B, H, W) -> (Cout, B, Ho, Wo)."""
    cin, B, H, W = x.shape
    xp = jnp.pad(x, ((0, 0), (0, 0), (cfg.ph, cfg.ph), (cfg.pw, cfg.pw)))
    Ho = (H + 2 * cfg.ph - cfg.kh) // cfg.sh + 1
    Wo = (W + 2 * cfg.pw - cfg.kw) // cfg.sw + 1
    rows = (jnp.arange(Ho) * cfg.sh)[:, None] + jnp.arange(cfg.kh)[None, :]
    cols = (jnp.arange(Wo) * cfg.sw)[:, None] + jnp.arange(cfg.kw)[None, :]
    # TODO(synk): im2col gather + transpose remain jit-fused XLA glue; an in-kernel
    # patch read (BlockSpec over (Ho, Wo) with strided slices) would avoid the
    # KH*KW HBM blow-up entirely but is out of scope here.
    p = xp[:, :, rows, :]                         # (Cin, B, Ho, KH, Wp)
    p = p[:, :, :, :, cols]                       # (Cin, B, Ho, KH, Wo, KW)
    p = jnp.transpose(p, (0, 3, 5, 1, 2, 4))      # (Cin, KH, KW, B, Ho, Wo)
    patches_t = p.reshape(cin * cfg.kh * cfg.kw, B * Ho * Wo)
    out = conv_matmul(wm, patches_t, slope)       # (coutp, B*Ho*Wo), lane-dense
    return out[:cfg.cout].reshape(cfg.cout, B, Ho, Wo)


def discriminator_r_forward(arrays, cfg: ResCfg, x):
    h = spectrogram_cbhw(x, arrays["basis"], cfg)          # (1, B, F, T)
    fmap = []
    for lcfg, wm in zip(cfg.layers[:-1], arrays["w"][:-1]):
        h = conv2d_cbhw(h, wm, lcfg, slope=LRELU_SLOPE)    # fused bias + leaky_relu
        fmap.append(jnp.transpose(h, (1, 0, 2, 3)))        # NCHW, as torch returns
    h = conv2d_cbhw(h, arrays["w"][-1], cfg.layers[-1], slope=None)   # conv_post
    h = jnp.transpose(h, (1, 0, 2, 3))                     # (B, 1, Ho, Wo)
    fmap.append(h)
    return h.reshape(h.shape[0], -1), fmap                 # torch.flatten(x, 1, -1)


def build_mrd(key, d_mult, resolutions):
    keys = jax.random.split(key, len(resolutions))
    cfgs, all_arrays = [], []
    for k, res in zip(keys, resolutions):
        cfg, arrays = build_discriminator_r(k, d_mult, res)
        cfgs.append(cfg)
        all_arrays.append(arrays)

    def forward(params, y, y_hat):
        B = y.shape[0]
        yy = jnp.concatenate([y, y_hat], axis=0)   # batch real+fake: one pass each
        y_d_rs, y_d_gs, fmap_rs, fmap_gs = [], [], [], []
        for cfg, arrays in zip(cfgs, params):
            out, fmap = discriminator_r_forward(arrays, cfg, yy)
            y_d_rs.append(out[:B])
            y_d_gs.append(out[B:])
            fmap_rs.append([f[:B] for f in fmap])
            fmap_gs.append([f[B:] for f in fmap])
        return y_d_rs, y_d_gs, fmap_rs, fmap_gs

    return all_arrays, jax.jit(forward)


# ---------------------------------------------------------------------------
# Demo
# ---------------------------------------------------------------------------

if __name__ == "__main__":
    # Synthetic config (cfg.model.mrd.*): small resolutions + channel mult 0.25
    resolutions = [[64, 16, 32], [128, 32, 64], [32, 8, 16]]
    d_mult = 0.25  # -> int(32 * 0.25) = 8 channels

    key = jax.random.PRNGKey(0)
    kp, ky, kg = jax.random.split(key, 3)
    all_params, mrd_forward = build_mrd(kp, d_mult, resolutions)

    B, L = 2, 256
    y = jax.random.normal(ky, (B, 1, L), jnp.float32)
    y_hat = jax.random.normal(kg, (B, 1, L), jnp.float32)

    outputs = mrd_forward(all_params, y, y_hat)
    outputs = jax.block_until_ready(outputs)

    # light sanity checks on structure
    y_d_rs, y_d_gs, fmap_rs, fmap_gs = outputs
    assert len(y_d_rs) == 3 and len(y_d_gs) == 3
    assert all(len(fm) == 6 for fm in fmap_rs) and all(len(fm) == 6 for fm in fmap_gs)
    assert all(o.shape[0] == B and o.ndim == 2 for o in y_d_rs + y_d_gs)
    assert all(f.shape[0] == B and f.shape[1] == int(32 * d_mult)
               for fm in fmap_rs + fmap_gs for f in fm[:-1])
    assert all(fm[-1].shape[:2] == (B, 1) for fm in fmap_rs + fmap_gs)
    assert all(jnp.all(jnp.isfinite(o)) for o in y_d_rs + y_d_gs)

    print("KERNEL_OK")
</pallas_src>

<mosaic_0001>
module attributes {stable_mosaic.version = 11 : i64} {
  func.func @_stft_mag_kernel(%arg0: i32, %arg1: memref<32x128xbf16, #tpu.memory_space<vmem>>, %arg2: memref<128x256xbf16, #tpu.memory_space<vmem>>, %arg3: memref<32x128xf32, #tpu.memory_space<vmem>>) attributes {dimension_semantics = [#tpu.dimension_semantics<parallel>], iteration_bounds = array<i64: 1>, scalar_prefetch = 0 : i64, scratch_operands = 0 : i64, tpu.core_type = #tpu.core_type<tc>, window_params = [{transform_indices = @transform_0, window_bounds = array<i64: 32, 128>}, {pipeline_mode = #tpu.pipeline_mode<synchronous>, transform_indices = @transform_1, window_bounds = array<i64: 128, 256>}, {transform_indices = @transform_2, window_bounds = array<i64: 32, 128>}]} {
    %c0 = arith.constant 0 : index
    %c0_0 = arith.constant 0 : index
    %0 = vector.load %arg1[%c0, %c0_0] : memref<32x128xbf16, #tpu.memory_space<vmem>>, vector<32x128xbf16>
    %c0_1 = arith.constant 0 : index
    %c0_2 = arith.constant 0 : index
    %1 = vector.load %arg2[%c0_1, %c0_2] : memref<128x256xbf16, #tpu.memory_space<vmem>>, vector<128x256xbf16>
    %cst = arith.constant dense<0.000000e+00> : vector<32x256xf32>
    %2 = tpu.matmul %0, %1, %cst {dimension_numbers = #tpu.dot_dimension_numbers<[1], [0], [0], [1], [0, 0, 1, 1], [], []>} : vector<32x128xbf16>, vector<128x256xbf16>, vector<32x256xf32> -> vector<32x256xf32>
    %3 = vector.extract_strided_slice %2 {offsets = [0, 0], sizes = [32, 128], strides = [1, 1]} : vector<32x256xf32> to vector<32x128xf32>
    %4 = vector.extract_strided_slice %2 {offsets = [0, 128], sizes = [32, 128], strides = [1, 1]} : vector<32x256xf32> to vector<32x128xf32>
    %5 = arith.mulf %3, %3 : vector<32x128xf32>
    %6 = arith.mulf %4, %4 : vector<32x128xf32>
    %7 = arith.addf %5, %6 : vector<32x128xf32>
    %8 = math.sqrt %7 : vector<32x128xf32>
    %c0_3 = arith.constant 0 : index
    %c0_4 = arith.constant 0 : index
    %9 = vector.load %arg3[%c0_3, %c0_4] : memref<32x128xf32, #tpu.memory_space<vmem>>, vector<32x128xf32>
    tpu.vector_store %arg3[%c0_3, %c0_4], %8 {strides = array<i32>} : memref<32x128xf32, #tpu.memory_space<vmem>>, vector<32x128xf32>,
    return
  }
  func.func @transform_0(%arg0: i32) -> (i32, i32) {
    %c0_i32 = arith.constant 0 : i32
    %c0_i32_0 = arith.constant 0 : i32
    return %arg0, %c0_i32 : i32, i32
  }
  func.func @transform_1(%arg0: i32) -> (i32, i32) {
    %c0_i32 = arith.constant 0 : i32
    %c0_i32_0 = arith.constant 0 : i32
    %c0_i32_1 = arith.constant 0 : i32
    return %c0_i32, %c0_i32_0 : i32, i32
  }
  func.func @transform_2(%arg0: i32) -> (i32, i32) {
    %c0_i32 = arith.constant 0 : i32
    %c0_i32_0 = arith.constant 0 : i32
    return %arg0, %c0_i32 : i32, i32
  }
}

module attributes {stable_mosaic.version = 11 : i64} {
  func.func @_stft_mag_kernel(%arg0: i32, %arg1: memref<64x64xbf16, #tpu.memory_space<vmem>>, %arg2: memref<64x256xbf16, #tpu.memory_space<vmem>>, %arg3: memref<64x128xf32, #tpu.memory_space<vmem>>) attributes {dimension_semantics = [#tpu.dimension_semantics<parallel>], iteration_bounds = array<i64: 1>, scalar_prefetch = 0 : i64, scratch_operands = 0 : i64, tpu.core_type = #tpu.core_type<tc>, window_params = [{transform_indices = @transform_0, window_bounds = array<i64: 64, 64>}, {pipeline_mode = #tpu.pipeline_mode<synchronous>, transform_indices = @transform_1, window_bounds = array<i64: 64, 256>}, {transform_indices = @transform_2, window_bounds = array<i64: 64, 128>}]} {
    %c0 = arith.constant 0 : index
    %c0_0 = arith.constant 0 : index
    %0 = vector.load %arg1[%c0, %c0_0] : memref<64x64xbf16, #tpu.memory_space<vmem>>, vector<64x64xbf16>
    %c0_1 = arith.constant 0 : index
    %c0_2 = arith.constant 0 : index
    %1 = vector.load %arg2[%c0_1, %c0_2] : memref<64x256xbf16, #tpu.memory_space<vmem>>, vector<64x256xbf16>
    %cst = arith.constant dense<0.000000e+00> : vector<64x256xf32>
    %2 = tpu.matmul %0, %1, %cst {dimension_numbers = #tpu.dot_dimension_numbers<[1], [0], [0], [1], [0, 0, 1, 1], [], []>} : vector<64x64xbf16>, vector<64x256xbf16>, vector<64x256xf32> -> vector<64x256xf32>
    %3 = vector.extract_strided_slice %2 {offsets = [0, 0], sizes = [64, 128], strides = [1, 1]} : vector<64x256xf32> to vector<64x128xf32>
    %4 = vector.extract_strided_slice %2 {offsets = [0, 128], sizes = [64, 128], strides = [1, 1]} : vector<64x256xf32> to vector<64x128xf32>
    %5 = arith.mulf %3, %3 : vector<64x128xf32>
    %6 = arith.mulf %4, %4 : vector<64x128xf32>
    %7 = arith.addf %5, %6 : vector<64x128xf32>
    %8 = math.sqrt %7 : vector<64x128xf32>
    %c0_3 = arith.constant 0 : index
    %c0_4 = arith.constant 0 : index
    %9 = vector.load %arg3[%c0_3, %c0_4] : memref<64x128xf32, #tpu.memory_space<vmem>>, vector<64x128xf32>
    tpu.vector_store %arg3[%c0_3, %c0_4], %8 {strides = array<i32>} : memref<64x128xf32, #tpu.memory_space<vmem>>, vector<64x128xf32>,
    return
  }
  func.func @transform_0(%arg0: i32) -> (i32, i32) {
    %c0_i32 = arith.constant 0 : i32
    %c0_i32_0 = arith.constant 0 : i32
    return %arg0, %c0_i32 : i32, i32
  }
  func.func @transform_1(%arg0: i32) -> (i32, i32) {
    %c0_i32 = arith.constant 0 : i32
    %c0_i32_0 = arith.constant 0 : i32
    %c0_i32_1 = arith.constant 0 : i32
    return %c0_i32, %c0_i32_0 : i32, i32
  }
  func.func @transform_2(%arg0: i32) -> (i32, i32) {
    %c0_i32 = arith.constant 0 : i32
    %c0_i32_0 = arith.constant 0 : i32
    return %arg0, %c0_i32 : i32, i32
  }
}

module attributes {stable_mosaic.version = 11 : i64} {
  func.func @_stft_mag_kernel(%arg0: i32, %arg1: memref<128x32xbf16, #tpu.memory_space<vmem>>, %arg2: memref<32x256xbf16, #tpu.memory_space<vmem>>, %arg3: memref<128x128xf32, #tpu.memory_space<vmem>>) attributes {dimension_semantics = [#tpu.dimension_semantics<parallel>], iteration_bounds = array<i64: 1>, scalar_prefetch = 0 : i64, scratch_operands = 0 : i64, tpu.core_type = #tpu.core_type<tc>, window_params = [{transform_indices = @transform_0, window_bounds = array<i64: 128, 32>}, {pipeline_mode = #tpu.pipeline_mode<synchronous>, transform_indices = @transform_1, window_bounds = array<i64: 32, 256>}, {transform_indices = @transform_2, window_bounds = array<i64: 128, 128>}]} {
    %c0 = arith.constant 0 : index
    %c0_0 = arith.constant 0 : index
    %0 = vector.load %arg1[%c0, %c0_0] : memref<128x32xbf16, #tpu.memory_space<vmem>>, vector<128x32xbf16>
    %c0_1 = arith.constant 0 : index
    %c0_2 = arith.constant 0 : index
    %1 = vector.load %arg2[%c0_1, %c0_2] : memref<32x256xbf16, #tpu.memory_space<vmem>>, vector<32x256xbf16>
    %cst = arith.constant dense<0.000000e+00> : vector<128x256xf32>
    %2 = tpu.matmul %0, %1, %cst {dimension_numbers = #tpu.dot_dimension_numbers<[1], [0], [0], [1], [0, 0, 1, 1], [], []>} : vector<128x32xbf16>, vector<32x256xbf16>, vector<128x256xf32> -> vector<128x256xf32>
    %3 = vector.extract_strided_slice %2 {offsets = [0, 0], sizes = [128, 128], strides = [1, 1]} : vector<128x256xf32> to vector<128x128xf32>
    %4 = vector.extract_strided_slice %2 {offsets = [0, 128], sizes = [128, 128], strides = [1, 1]} : vector<128x256xf32> to vector<128x128xf32>
    %5 = arith.mulf %3, %3 : vector<128x128xf32>
    %6 = arith.mulf %4, %4 : vector<128x128xf32>
    %7 = arith.addf %5, %6 : vector<128x128xf32>
    %8 = math.sqrt %7 : vector<128x128xf32>
    %c0_3 = arith.constant 0 : index
    %c0_4 = arith.constant 0 : index
    %9 = vector.load %arg3[%c0_3, %c0_4] : memref<128x128xf32, #tpu.memory_space<vmem>>, vector<128x128xf32>
    tpu.vector_store %arg3[%c0_3, %c0_4], %8 {strides = array<i32>} : memref<128x128xf32, #tpu.memory_space<vmem>>, vector<128x128xf32>,
    return
  }
  func.func @transform_0(%arg0: i32) -> (i32, i32) {
    %c0_i32 = arith.constant 0 : i32
    %c0_i32_0 = arith.constant 0 : i32
    return %arg0, %c0_i32 : i32, i32
  }
  func.func @transform_1(%arg0: i32) -> (i32, i32) {
    %c0_i32 = arith.constant 0 : i32
    %c0_i32_0 = arith.constant 0 : i32
    %c0_i32_1 = arith.constant 0 : i32
    return %c0_i32, %c0_i32_0 : i32, i32
  }
  func.func @transform_2(%arg0: i32) -> (i32, i32) {
    %c0_i32 = arith.constant 0 : i32
    %c0_i32_0 = arith.constant 0 : i32
    return %arg0, %c0_i32 : i32, i32
  }
}

module attributes {stable_mosaic.version = 11 : i64} {
  func.func @_conv_bias_act_kernel(%arg0: i32, %arg1: memref<8x32xbf16, #tpu.memory_space<vmem>>, %arg2: memref<32x512xbf16, #tpu.memory_space<vmem>>, %arg3: memref<8x512xf32, #tpu.memory_space<vmem>>) attributes {dimension_semantics = [#tpu.dimension_semantics<parallel>], iteration_bounds = array<i64: 5>, scalar_prefetch = 0 : i64, scratch_operands = 0 : i64, tpu.core_type = #tpu.core_type<tc>, window_params = [{pipeline_mode = #tpu.pipeline_mode<synchronous>, transform_indices = @transform_0, window_bounds = array<i64: 8, 32>}, {transform_indices = @transform_1, window_bounds = array<i64: 32, 512>}, {transform_indices = @transform_2, window_bounds = array<i64: 8, 512>}]} {
    %c0 = arith.constant 0 : index
    %c0_0 = arith.constant 0 : index
    %0 = vector.load %arg1[%c0, %c0_0] : memref<8x32xbf16, #tpu.memory_space<vmem>>, vector<8x32xbf16>
    %c0_1 = arith.constant 0 : index
    %c0_2 = arith.constant 0 : index
    %1 = vector.load %arg2[%c0_1, %c0_2] : memref<32x512xbf16, #tpu.memory_space<vmem>>, vector<32x512xbf16>
    %cst = arith.constant dense<0.000000e+00> : vector<8x512xf32>
    %2 = tpu.matmul %0, %1, %cst {dimension_numbers = #tpu.dot_dimension_numbers<[1], [0], [0], [1], [0, 0, 1, 1], [], []>} : vector<8x32xbf16>, vector<32x512xbf16>, vector<8x512xf32> -> vector<8x512xf32>
    %cst_3 = arith.constant 0.000000e+00 : f32
    %3 = vector.broadcast %cst_3 : f32 to vector<8x512xf32>
    %4 = arith.cmpf oge, %2, %3 : vector<8x512xf32>
    %cst_4 = arith.constant 1.000000e-01 : f32
    %5 = vector.broadcast %cst_4 : f32 to vector<8x512xf32>
    %6 = arith.mulf %5, %2 : vector<8x512xf32>
    %7 = arith.select %4, %2, %6 : vector<8x512xi1>, vector<8x512xf32>
    %c0_5 = arith.constant 0 : index
    %c0_6 = arith.constant 0 : index
    %8 = vector.load %arg3[%c0_5, %c0_6] : memref<8x512xf32, #tpu.memory_space<vmem>>, vector<8x512xf32>
    tpu.vector_store %arg3[%c0_5, %c0_6], %7 {strides = array<i32>} : memref<8x512xf32, #tpu.memory_space<vmem>>, vector<8x512xf32>,
    return
  }
  func.func @transform_0(%arg0: i32) -> (i32, i32) {
    %c0_i32 = arith.constant 0 : i32
    %c0_i32_0 = arith.constant 0 : i32
    %c0_i32_1 = arith.constant 0 : i32
    return %c0_i32, %c0_i32_0 : i32, i32
  }
  func.func @transform_1(%arg0: i32) -> (i32, i32) {
    %c0_i32 = arith.constant 0 : i32
    %c0_i32_0 = arith.constant 0 : i32
    return %c0_i32, %arg0 : i32, i32
  }
  func.func @transform_2(%arg0: i32) -> (i32, i32) {
    %c0_i32 = arith.constant 0 : i32
    %c0_i32_0 = arith.constant 0 : i32
    return %c0_i32, %arg0 : i32, i32
  }
}

module attributes {stable_mosaic.version = 11 : i64} {
  func.func @_conv_bias_act_kernel(%arg0: i32, %arg1: memref<8x224xbf16, #tpu.memory_space<vmem>>, %arg2: memref<224x512xbf16, #tpu.memory_space<vmem>>, %arg3: memref<8x512xf32, #tpu.memory_space<vmem>>) attributes {dimension_semantics = [#tpu.dimension_semantics<parallel>], iteration_bounds = array<i64: 3>, scalar_prefetch = 0 : i64, scratch_operands = 0 : i64, tpu.core_type = #tpu.core_type<tc>, window_params = [{pipeline_mode = #tpu.pipeline_mode<synchronous>, transform_indices = @transform_0, window_bounds = array<i64: 8, 224>}, {transform_indices = @transform_1, window_bounds = array<i64: 224, 512>}, {transform_indices = @transform_2, window_bounds = array<i64: 8, 512>}]} {
    %c0 = arith.constant 0 : index
    %c0_0 = arith.constant 0 : index
    %0 = vector.load %arg1[%c0, %c0_0] : memref<8x224xbf16, #tpu.memory_space<vmem>>, vector<8x224xbf16>
    %c0_1 = arith.constant 0 : index
    %c0_2 = arith.constant 0 : index
    %1 = vector.load %arg2[%c0_1, %c0_2] : memref<224x512xbf16, #tpu.memory_space<vmem>>, vector<224x512xbf16>
    %cst = arith.constant dense<0.000000e+00> : vector<8x512xf32>
    %2 = tpu.matmul %0, %1, %cst {dimension_numbers = #tpu.dot_dimension_numbers<[1], [0], [0], [1], [0, 0, 1, 1], [], []>} : vector<8x224xbf16>, vector<224x512xbf16>, vector<8x512xf32> -> vector<8x512xf32>
    %cst_3 = arith.constant 0.000000e+00 : f32
    %3 = vector.broadcast %cst_3 : f32 to vector<8x512xf32>
    %4 = arith.cmpf oge, %2, %3 : vector<8x512xf32>
    %cst_4 = arith.constant 1.000000e-01 : f32
    %5 = vector.broadcast %cst_4 : f32 to vector<8x512xf32>
    %6 = arith.mulf %5, %2 : vector<8x512xf32>
    %7 = arith.select %4, %2, %6 : vector<8x512xi1>, vector<8x512xf32>
    %c0_5 = arith.constant 0 : index
    %c0_6 = arith.constant 0 : index
    %8 = vector.load %arg3[%c0_5, %c0_6] : memref<8x512xf32, #tpu.memory_space<vmem>>, vector<8x512xf32>
    tpu.vector_store %arg3[%c0_5, %c0_6], %7 {strides = array<i32>} : memref<8x512xf32, #tpu.memory_space<vmem>>, vector<8x512xf32>,
    return
  }
  func.func @transform_0(%arg0: i32) -> (i32, i32) {
    %c0_i32 = arith.constant 0 : i32
    %c0_i32_0 = arith.constant 0 : i32
    %c0_i32_1 = arith.constant 0 : i32
    return %c0_i32, %c0_i32_0 : i32, i32
  }
  func.func @transform_1(%arg0: i32) -> (i32, i32) {
    %c0_i32 = arith.constant 0 : i32
    %c0_i32_0 = arith.constant 0 : i32
    return %c0_i32, %arg0 : i32, i32
  }
  func.func @transform_2(%arg0: i32) -> (i32, i32) {
    %c0_i32 = arith.constant 0 : i32
    %c0_i32_0 = arith.constant 0 : i32
    return %c0_i32, %arg0 : i32, i32
  }
}

module attributes {stable_mosaic.version = 11 : i64} {
  func.func @_conv_bias_act_kernel(%arg0: i32, %arg1: memref<8x224xbf16, #tpu.memory_space<vmem>>, %arg2: memref<224x512xbf16, #tpu.memory_space<vmem>>, %arg3: memref<8x512xf32, #tpu.memory_space<vmem>>) attributes {dimension_semantics = [#tpu.dimension_semantics<parallel>], iteration_bounds = array<i64: 2>, scalar_prefetch = 0 : i64, scratch_operands = 0 : i64, tpu.core_type = #tpu.core_type<tc>, window_params = [{pipeline_mode = #tpu.pipeline_mode<synchronous>, transform_indices = @transform_0, window_bounds = array<i64: 8, 224>}, {transform_indices = @transform_1, window_bounds = array<i64: 224, 512>}, {transform_indices = @transform_2, window_bounds = array<i64: 8, 512>}]} {
    %c0 = arith.constant 0 : index
    %c0_0 = arith.constant 0 : index
    %0 = vector.load %arg1[%c0, %c0_0] : memref<8x224xbf16, #tpu.memory_space<vmem>>, vector<8x224xbf16>
    %c0_1 = arith.constant 0 : index
    %c0_2 = arith.constant 0 : index
    %1 = vector.load %arg2[%c0_1, %c0_2] : memref<224x512xbf16, #tpu.memory_space<vmem>>, vector<224x512xbf16>
    %cst = arith.constant dense<0.000000e+00> : vector<8x512xf32>
    %2 = tpu.matmul %0, %1, %cst {dimension_numbers = #tpu.dot_dimension_numbers<[1], [0], [0], [1], [0, 0, 1, 1], [], []>} : vector<8x224xbf16>, vector<224x512xbf16>, vector<8x512xf32> -> vector<8x512xf32>
    %cst_3 = arith.constant 0.000000e+00 : f32
    %3 = vector.broadcast %cst_3 : f32 to vector<8x512xf32>
    %4 = arith.cmpf oge, %2, %3 : vector<8x512xf32>
    %cst_4 = arith.constant 1.000000e-01 : f32
    %5 = vector.broadcast %cst_4 : f32 to vector<8x512xf32>
    %6 = arith.mulf %5, %2 : vector<8x512xf32>
    %7 = arith.select %4, %2, %6 : vector<8x512xi1>, vector<8x512xf32>
    %c0_5 = arith.constant 0 : index
    %c0_6 = arith.constant 0 : index
    %8 = vector.load %arg3[%c0_5, %c0_6] : memref<8x512xf32, #tpu.memory_space<vmem>>, vector<8x512xf32>
    tpu.vector_store %arg3[%c0_5, %c0_6], %7 {strides = array<i32>} : memref<8x512xf32, #tpu.memory_space<vmem>>, vector<8x512xf32>,
    return
  }
  func.func @transform_0(%arg0: i32) -> (i32, i32) {
    %c0_i32 = arith.constant 0 : i32
    %c0_i32_0 = arith.constant 0 : i32
    %c0_i32_1 = arith.constant 0 : i32
    return %c0_i32, %c0_i32_0 : i32, i32
  }
  func.func @transform_1(%arg0: i32) -> (i32, i32) {
    %c0_i32 = arith.constant 0 : i32
    %c0_i32_0 = arith.constant 0 : i32
    return %c0_i32, %arg0 : i32, i32
  }
  func.func @transform_2(%arg0: i32) -> (i32, i32) {
    %c0_i32 = arith.constant 0 : i32
    %c0_i32_0 = arith.constant 0 : i32
    return %c0_i32, %arg0 : i32, i32
  }
}

module attributes {stable_mosaic.version = 11 : i64} {
  func.func @_conv_bias_act_kernel(%arg0: i32, %arg1: memref<8x224xbf16, #tpu.memory_space<vmem>>, %arg2: memref<224x384xbf16, #tpu.memory_space<vmem>>, %arg3: memref<8x384xf32, #tpu.memory_space<vmem>>) attributes {dimension_semantics = [#tpu.dimension_semantics<parallel>], iteration_bounds = array<i64: 1>, scalar_prefetch = 0 : i64, scratch_operands = 0 : i64, tpu.core_type = #tpu.core_type<tc>, window_params = [{pipeline_mode = #tpu.pipeline_mode<synchronous>, transform_indices = @transform_0, window_bounds = array<i64: 8, 224>}, {transform_indices = @transform_1, window_bounds = array<i64: 224, 384>}, {transform_indices = @transform_2, window_bounds = array<i64: 8, 384>}]} {
    %c0 = arith.constant 0 : index
    %c0_0 = arith.constant 0 : index
    %0 = vector.load %arg1[%c0, %c0_0] : memref<8x224xbf16, #tpu.memory_space<vmem>>, vector<8x224xbf16>
    %c0_1 = arith.constant 0 : index
    %c0_2 = arith.constant 0 : index
    %1 = vector.load %arg2[%c0_1, %c0_2] : memref<224x384xbf16, #tpu.memory_space<vmem>>, vector<224x384xbf16>
    %cst = arith.constant dense<0.000000e+00> : vector<8x384xf32>
    %2 = tpu.matmul %0, %1, %cst {dimension_numbers = #tpu.dot_dimension_numbers<[1], [0], [0], [1], [0, 0, 1, 1], [], []>} : vector<8x224xbf16>, vector<224x384xbf16>, vector<8x384xf32> -> vector<8x384xf32>
    %cst_3 = arith.constant 0.000000e+00 : f32
    %3 = vector.broadcast %cst_3 : f32 to vector<8x384xf32>
    %4 = arith.cmpf oge, %2, %3 : vector<8x384xf32>
    %cst_4 = arith.constant 1.000000e-01 : f32
    %5 = vector.broadcast %cst_4 : f32 to vector<8x384xf32>
    %6 = arith.mulf %5, %2 : vector<8x384xf32>
    %7 = arith.select %4, %2, %6 : vector<8x384xi1>, vector<8x384xf32>
    %c0_5 = arith.constant 0 : index
    %c0_6 = arith.constant 0 : index
    %8 = vector.load %arg3[%c0_5, %c0_6] : memref<8x384xf32, #tpu.memory_space<vmem>>, vector<8x384xf32>
    tpu.vector_store %arg3[%c0_5, %c0_6], %7 {strides = array<i32>} : memref<8x384xf32, #tpu.memory_space<vmem>>, vector<8x384xf32>,
    return
  }
  func.func @transform_0(%arg0: i32) -> (i32, i32) {
    %c0_i32 = arith.constant 0 : i32
    %c0_i32_0 = arith.constant 0 : i32
    %c0_i32_1 = arith.constant 0 : i32
    return %c0_i32, %c0_i32_0 : i32, i32
  }
  func.func @transform_1(%arg0: i32) -> (i32, i32) {
    %c0_i32 = arith.constant 0 : i32
    %c0_i32_0 = arith.constant 0 : i32
    return %c0_i32, %arg0 : i32, i32
  }
  func.func @transform_2(%arg0: i32) -> (i32, i32) {
    %c0_i32 = arith.constant 0 : i32
    %c0_i32_0 = arith.constant 0 : i32
    return %c0_i32, %arg0 : i32, i32
  }
}

module attributes {stable_mosaic.version = 11 : i64} {
  func.func @_conv_bias_act_kernel(%arg0: i32, %arg1: memref<8x80xbf16, #tpu.memory_space<vmem>>, %arg2: memref<80x384xbf16, #tpu.memory_space<vmem>>, %arg3: memref<8x384xf32, #tpu.memory_space<vmem>>) attributes {dimension_semantics = [#tpu.dimension_semantics<parallel>], iteration_bounds = array<i64: 1>, scalar_prefetch = 0 : i64, scratch_operands = 0 : i64, tpu.core_type = #tpu.core_type<tc>, window_params = [{pipeline_mode = #tpu.pipeline_mode<synchronous>, transform_indices = @transform_0, window_bounds = array<i64: 8, 80>}, {transform_indices = @transform_1, window_bounds = array<i64: 80, 384>}, {transform_indices = @transform_2, window_bounds = array<i64: 8, 384>}]} {
    %c0 = arith.constant 0 : index
    %c0_0 = arith.constant 0 : index
    %0 = vector.load %arg1[%c0, %c0_0] : memref<8x80xbf16, #tpu.memory_space<vmem>>, vector<8x80xbf16>
    %c0_1 = arith.constant 0 : index
    %c0_2 = arith.constant 0 : index
    %1 = vector.load %arg2[%c0_1, %c0_2] : memref<80x384xbf16, #tpu.memory_space<vmem>>, vector<80x384xbf16>
    %cst = arith.constant dense<0.000000e+00> : vector<8x384xf32>
    %2 = tpu.matmul %0, %1, %cst {dimension_numbers = #tpu.dot_dimension_numbers<[1], [0], [0], [1], [0, 0, 1, 1], [], []>} : vector<8x80xbf16>, vector<80x384xbf16>, vector<8x384xf32> -> vector<8x384xf32>
    %cst_3 = arith.constant 0.000000e+00 : f32
    %3 = vector.broadcast %cst_3 : f32 to vector<8x384xf32>
    %4 = arith.cmpf oge, %2, %3 : vector<8x384xf32>
    %cst_4 = arith.constant 1.000000e-01 : f32
    %5 = vector.broadcast %cst_4 : f32 to vector<8x384xf32>
    %6 = arith.mulf %5, %2 : vector<8x384xf32>
    %7 = arith.select %4, %2, %6 : vector<8x384xi1>, vector<8x384xf32>
    %c0_5 = arith.constant 0 : index
    %c0_6 = arith.constant 0 : index
    %8 = vector.load %arg3[%c0_5, %c0_6] : memref<8x384xf32, #tpu.memory_space<vmem>>, vector<8x384xf32>
    tpu.vector_store %arg3[%c0_5, %c0_6], %7 {strides = array<i32>} : memref<8x384xf32, #tpu.memory_space<vmem>>, vector<8x384xf32>,
    return
  }
  func.func @transform_0(%arg0: i32) -> (i32, i32) {
    %c0_i32 = arith.constant 0 : i32
    %c0_i32_0 = arith.constant 0 : i32
    %c0_i32_1 = arith.constant 0 : i32
    return %c0_i32, %c0_i32_0 : i32, i32
  }
  func.func @transform_1(%arg0: i32) -> (i32, i32) {
    %c0_i32 = arith.constant 0 : i32
    %c0_i32_0 = arith.constant 0 : i32
    return %c0_i32, %arg0 : i32, i32
  }
  func.func @transform_2(%arg0: i32) -> (i32, i32) {
    %c0_i32 = arith.constant 0 : i32
    %c0_i32_0 = arith.constant 0 : i32
    return %c0_i32, %arg0 : i32, i32
  }
}

module attributes {stable_mosaic.version = 11 : i64} {
  func.func @_conv_bias_act_kernel(%arg0: i32, %arg1: memref<8x80xbf16, #tpu.memory_space<vmem>>, %arg2: memref<80x384xbf16, #tpu.memory_space<vmem>>, %arg3: memref<8x384xf32, #tpu.memory_space<vmem>>) attributes {dimension_semantics = [#tpu.dimension_semantics<parallel>], iteration_bounds = array<i64: 1>, scalar_prefetch = 0 : i64, scratch_operands = 0 : i64, tpu.core_type = #tpu.core_type<tc>, window_params = [{pipeline_mode = #tpu.pipeline_mode<synchronous>, transform_indices = @transform_0, window_bounds = array<i64: 8, 80>}, {transform_indices = @transform_1, window_bounds = array<i64: 80, 384>}, {transform_indices = @transform_2, window_bounds = array<i64: 8, 384>}]} {
    %c0 = arith.constant 0 : index
    %c0_0 = arith.constant 0 : index
    %0 = vector.load %arg1[%c0, %c0_0] : memref<8x80xbf16, #tpu.memory_space<vmem>>, vector<8x80xbf16>
    %c0_1 = arith.constant 0 : index
    %c0_2 = arith.constant 0 : index
    %1 = vector.load %arg2[%c0_1, %c0_2] : memref<80x384xbf16, #tpu.memory_space<vmem>>, vector<80x384xbf16>
    %cst = arith.constant dense<0.000000e+00> : vector<8x384xf32>
    %2 = tpu.matmul %0, %1, %cst {dimension_numbers = #tpu.dot_dimension_numbers<[1], [0], [0], [1], [0, 0, 1, 1], [], []>} : vector<8x80xbf16>, vector<80x384xbf16>, vector<8x384xf32> -> vector<8x384xf32>
    %c0_3 = arith.constant 0 : index
    %c0_4 = arith.constant 0 : index
    %3 = vector.load %arg3[%c0_3, %c0_4] : memref<8x384xf32, #tpu.memory_space<vmem>>, vector<8x384xf32>
    tpu.vector_store %arg3[%c0_3, %c0_4], %2 {strides = array<i32>} : memref<8x384xf32, #tpu.memory_space<vmem>>, vector<8x384xf32>,
    return
  }
  func.func @transform_0(%arg0: i32) -> (i32, i32) {
    %c0_i32 = arith.constant 0 : i32
    %c0_i32_0 = arith.constant 0 : i32
    %c0_i32_1 = arith.constant 0 : i32
    return %c0_i32, %c0_i32_0 : i32, i32
  }
  func.func @transform_1(%arg0: i32) -> (i32, i32) {
    %c0_i32 = arith.constant 0 : i32
    %c0_i32_0 = arith.constant 0 : i32
    return %c0_i32, %arg0 : i32, i32
  }
  func.func @transform_2(%arg0: i32) -> (i32, i32) {
    %c0_i32 = arith.constant 0 : i32
    %c0_i32_0 = arith.constant 0 : i32
    return %c0_i32, %arg0 : i32, i32
  }
}

</mosaic_0001>

<bundles_post_ra>
// kernel: forward.28
= control target key start
LH: loop header
LB: loop body
LE: loop exit
PB: predicated region body
PF: predicated region fallthrough
CT: control target
= control target key end

     0   :  { %7 = vsyncpa [#allocation3], 0  ;;  %s336_s9 = smov [#allocation2]   ;;  %s385_s0 = inlined_call_operand.vmem [shape: bf16[32,128], index: 0, kind: input, shape index: {}]   ;;  %s386_s1 = inlined_call_operand.hbm [shape: bf16[128,256], index: 1, kind: input, shape index: {}]   ;;  %s387_s2 = inlined_call_operand.vmem [shape: f32[32,128], index: 2, kind: output, shape index: {}]  }
   0x1   :  { %s15_s10 = sshll.u32 %s336_s9, 4  ;;  %s312_s13 = scalar_lea.hbm %s386_s1, 2048  ;;  %s16_s10 = int_to_ptr.vmem [resolvable:$true] %s15_s10 }
   0x2   :  { %p313_p0 = scmp.ne.s32.totalorder %s386_s1, %s312_s13  ;;  %p316_p1 = scmp.lt.u32.totalorder %s312_s13, %s386_s1 }
   0x4   :  { %p318_p2 = pnand %p316_p1, %p313_p0 }
   0x6   :  { %321 = shalt.err (!%p318_p2)
}
   0x7   :  { %s322_s18 = scalar_lea.vmem %s16_s10, 2048  ;;  %p327_p4 = scmp.lt.s32.totalorder %s16_s10, %s16_s10 }
   0x8   :  { %p323_p3 = scmp.ne.s32.totalorder %s16_s10, %s322_s18  ;;  %p328_p5 = scmp.lt.s32.totalorder %s322_s18, %s322_s18 }
   0xa   :  { %p329_p6 = por %p328_p5, %p327_p4 }
   0xc   :  { %p330_p7 = pnand %p329_p6, %p323_p3 }
   0xe   :  { %333 = shalt.err (!%p330_p7)
}
   0xf   :  { %s337_s19 = smov 128   ;;  %s338_s20 = smov 8  }
  0x10   :  { %21 = dma.hbm_to_vmem [thread:$0]  %s386_s1, 2048, %s16_s10, [#allocation3], %s337_s19, %s337_s19, %s338_s20  }
  0x11   :  { %334 = dma.done.wait [#allocation3], 2048  }
  0x12   :  { %335 = vsyncadd [#allocation3], 4294965248  ;;  %v339_v0 = vmov 0   ;;  %v278_v1 = vld [vmem:[#allocation2 + $0x4] ss:$8 sps:$4 sm:$0xff]  }
  0x13   :  { %170 = vmatprep.mubr.bf16.mxu0 %v339_v0  ;;  %180 = vmatprep.mubr.bf16.mxu1 %v339_v0  ;;  %v280_v2 = vld [vmem:[#allocation2] ss:$8 sps:$4 sm:$0xff]   ;;  %v281_v3 = vld [vmem:[#allocation2 + $0x14] ss:$8 sps:$4 sm:$0xff]   ;;  %v283_v4 = vld [vmem:[#allocation2 + $0x10] ss:$8 sps:$4 sm:$0xff]  }
  0x14   :  { %138 = vmatprep.subr.bf16.mxu0 %v278_v1  ;;  %258 = vmatprep.subr.bf16.mxu1 %v278_v1  ;;  %v284_v5 = vld [vmem:[#allocation2 + $0x24] ss:$8 sps:$4 sm:$0xff]   ;;  %v286_v6 = vld [vmem:[#allocation2 + $0x20] ss:$8 sps:$4 sm:$0xff]   ;;  %v287_v7 = vld [vmem:[#allocation2 + $0x34] ss:$8 sps:$4 sm:$0xff]  }
  0x15   :  { %139 = vmatpush1.bf16.msra.mxu0 %v280_v2  ;;  %266 = vmatpush1.bf16.msra.mxu1 %v280_v2  ;;  %v289_v8 = vld [vmem:[#allocation2 + $0x30] ss:$8 sps:$4 sm:$0xff]   ;;  %v290_v9 = vld [vmem:[#allocation2 + $0x44] ss:$8 sps:$4 sm:$0xff]   ;;  %v292_v10 = vld [vmem:[#allocation2 + $0x40] ss:$8 sps:$4 sm:$0xff]  }
  0x16   :  { %140 = vmatprep.subr.bf16.mxu0 %v281_v3  ;;  %259 = vmatprep.subr.bf16.mxu1 %v281_v3  ;;  %v293_v11 = vld [vmem:[#allocation2 + $0x54] ss:$8 sps:$4 sm:$0xff]   ;;  %v295_v12 = vld [vmem:[#allocation2 + $0x50] ss:$8 sps:$4 sm:$0xff]   ;;  %v296_v13 = vld [vmem:[#allocation2 + $0x64] ss:$8 sps:$4 sm:$0xff]  }
  0x17   :  { %v298_v14 = vld [vmem:[#allocation2 + $0x60] ss:$8 sps:$4 sm:$0xff]   ;;  %v299_v15 = vld [vmem:[#allocation2 + $0x74] ss:$8 sps:$4 sm:$0xff]   ;;  %v301_v16 = vld [vmem:[#allocation2 + $0x70] ss:$8 sps:$4 sm:$0xff]  }
  0x18   :  { %v302_v17 = vld [vmem:[%s385_s0] sm:$0xff]   ;;  %v303_v18 = vld [vmem:[%s385_s0 + $0x8] sm:$0xff]  }
  0x19   :  { %141 = vmatpush1.bf16.msra.mxu0 %v283_v4  ;;  %267 = vmatpush1.bf16.msra.mxu1 %v283_v4 }
  0x1a   :  { %142 = vmatprep.subr.bf16.mxu0 %v284_v5  ;;  %260 = vmatprep.subr.bf16.mxu1 %v284_v5 }
  0x1d   :  { %143 = vmatpush1.bf16.msra.mxu0 %v286_v6  ;;  %268 = vmatpush1.bf16.msra.mxu1 %v286_v6 }
  0x1e   :  { %144 = vmatprep.subr.bf16.mxu0 %v287_v7  ;;  %261 = vmatprep.subr.bf16.mxu1 %v287_v7 }
  0x21   :  { %145 = vmatpush1.bf16.msra.mxu0 %v289_v8  ;;  %269 = vmatpush1.bf16.msra.mxu1 %v289_v8 }
  0x22   :  { %146 = vmatprep.subr.bf16.mxu0 %v290_v9  ;;  %262 = vmatprep.subr.bf16.mxu1 %v290_v9 }
  0x25   :  { %147 = vmatpush1.bf16.msra.mxu0 %v292_v10  ;;  %270 = vmatpush1.bf16.msra.mxu1 %v292_v10 }
  0x26   :  { %148 = vmatprep.subr.bf16.mxu0 %v293_v11  ;;  %263 = vmatprep.subr.bf16.mxu1 %v293_v11 }
  0x29   :  { %149 = vmatpush1.bf16.msra.mxu0 %v295_v12  ;;  %271 = vmatpush1.bf16.msra.mxu1 %v295_v12 }
  0x2a   :  { %150 = vmatprep.subr.bf16.mxu0 %v296_v13  ;;  %264 = vmatprep.subr.bf16.mxu1 %v296_v13 }
  0x2d   :  { %151 = vmatpush1.bf16.msra.mxu0 %v298_v14  ;;  %272 = vmatpush1.bf16.msra.mxu1 %v298_v14 }
  0x2e   :  { %152 = vmatprep.subr.bf16.mxu0 %v299_v15  ;;  %265 = vmatprep.subr.bf16.mxu1 %v299_v15 }
  0x31   :  { %153 = vmatpush1.bf16.msra.mxu0 %v301_v16  ;;  %273 = vmatpush1.bf16.msra.mxu1 %v301_v16 }
  0x34   :  { %171 = vmatmul.mubr.bf16.vlgmr.msra.gmra.mrb[0].mxu0 %v302_v17  ;;  %181 = vmatmul.mubr.bf16.vlgmr.msra.gmra.mrb[0].mxu1 %v303_v18 }
 0x107   :  { %v172_v19 = vpop.f32.mrb[0].mxu0  ;;  %v182_v20 = vpop.f32.mrb[0].mxu1 }
 0x108   :  { %v191_v21 = vmul.f32 %v172_v19, %v172_v19  ;;  %v193_v22 = vmul.f32 %v182_v20, %v182_v20  ;;  %v174_v23 = vpop.f32.mrb[1].mxu0  ;;  %v184_v24 = vpop.f32.mrb[1].mxu1 }
 0x109   :  { %v195_v25 = vmul.f32 %v174_v23, %v174_v23  ;;  %v197_v26 = vmul.f32 %v184_v24, %v184_v24  ;;  %v176_v27 = vpop.f32.mrb[2].mxu0  ;;  %v186_v28 = vpop.f32.mrb[2].mxu1 }
 0x10a   :  { %v192_v29 = vmul.f32 %v176_v27, %v176_v27  ;;  %v194_v30 = vmul.f32 %v186_v28, %v186_v28  ;;  %v178_v31 = vpop.f32.mrb[3].mxu0  ;;  %v188_v32 = vpop.f32.mrb[3].mxu1 }
 0x10b   :  { %v199_v33 = vadd.f32 %v195_v25, %v191_v21  ;;  %v201_v34 = vadd.f32 %v197_v26, %v193_v22  ;;  %v196_v35 = vmul.f32 %v178_v31, %v178_v31  ;;  %v198_v36 = vmul.f32 %v188_v32, %v188_v32 }
 0x10d   :  { %304 = vrsqrt.f32 %v199_v33  ;;  %v200_v37 = vadd.f32 %v196_v35, %v192_v29  ;;  %v202_v38 = vadd.f32 %v198_v36, %v194_v30  ;;  %vm205_vm0 = vcmp.eq.f32.partialorder %v199_v33, inf }
 0x10e   :  { %306 = vrsqrt.f32 %v201_v34  ;;  %v208_v42 = vand.u32 2147483648, %v199_v33  ;;  %vm207_vm1 = vcmp.eq.f32.partialorder %v199_v33, 0.0  ;;  %vm219_vm2 = vcmp.eq.f32.partialorder %v201_v34, inf }
 0x10f   :  { %308 = vrsqrt.f32 %v200_v37  ;;  %v222_v45 = vand.u32 2147483648, %v201_v34  ;;  %vm221_vm3 = vcmp.eq.f32.partialorder %v201_v34, 0.0  ;;  %vm212_vm4 = vcmp.eq.f32.partialorder %v200_v37, inf }
 0x110   :  { %310 = vrsqrt.f32 %v202_v38  ;;  %v215_v52 = vand.u32 2147483648, %v200_v37  ;;  %vm214_vm5 = vcmp.eq.f32.partialorder %v200_v37, 0.0  ;;  %vm226_vm6 = vcmp.eq.f32.partialorder %v202_v38, inf }
 0x111   :  { %v229_v55 = vand.u32 2147483648, %v202_v38  ;;  %vm228_vm7 = vcmp.eq.f32.partialorder %v202_v38, 0.0 }
 0x117   :  { %v305_v39 = vpop.eup %304 }
 0x118   :  { %v307_v40 = vpop.eup %306  ;;  %v204_v41 = vmul.f32 %v305_v39, %v199_v33 }
 0x119   :  { %v218_v43 = vmul.f32 %v307_v40, %v201_v34  ;;  %v309_v46 = vpop.eup %308 }
 0x11a   :  { %v206_v44 = vsel %vm205_vm0, %v199_v33, %v204_v41  ;;  %v311_v49 = vpop.eup %310  ;;  %v211_v51 = vmul.f32 %v309_v46, %v200_v37 }
 0x11b   :  { %v209_v47 = vsel %vm207_vm1, %v208_v42, %v206_v44  ;;  %v220_v48 = vsel %vm219_vm2, %v201_v34, %v218_v43  ;;  %v225_v53 = vmul.f32 %v311_v49, %v202_v38 }
 0x11c   :  { %231 = vst [vmem:[%s387_s2] sm:$0xff] %v209_v47  ;;  %v223_v50 = vsel %vm221_vm3, %v222_v45, %v220_v48  ;;  %v213_v54 = vsel %vm212_vm4, %v200_v37, %v211_v51 }
 0x11d   :  { %233 = vst [vmem:[%s387_s2 + $0x10] sm:$0xff] %v223_v50  ;;  %v216_v56 = vsel %vm214_vm5, %v215_v52, %v213_v54  ;;  %v227_v57 = vsel %vm226_vm6, %v202_v38, %v225_v53 }
 0x11e   :  { %232 = vst [vmem:[%s387_s2 + $0x8] sm:$0xff] %v216_v56  ;;  %v230_v58 = vsel %vm228_vm7, %v229_v55, %v227_v57 }
 0x11f   :  { %234 = vst [vmem:[%s387_s2 + $0x18] sm:$0xff] %v230_v58 }
 0x120   :  { %239 = vsyncpa [#allocation3], 1 }

// kernel: forward.21
= control target key start
LH: loop header
LB: loop body
LE: loop exit
PB: predicated region body
PF: predicated region fallthrough
CT: control target
= control target key end

     0   :  { %v323_v1 = vmov 0   ;;  %vm88_vm0 = vcmask 523264   ;;  %s423_s1 = inlined_call_operand.vmem [shape: bf16[64,256], index: 1, kind: input, shape index: {}]   ;;  %s424_s0 = inlined_call_operand.vmem [shape: bf16[64,64], index: 0, kind: input, shape index: {}]   ;;  %s425_s2 = inlined_call_operand.vmem [shape: f32[64,128], index: 2, kind: output, shape index: {}]  }
   0x1   :  { %v291_v0 = vld [vmem:[%s423_s1 + $0x4] ss:$8 sps:$4 sm:$0xff]   ;;  %133 = vmatprep.mubr.bf16.mxu0 %v323_v1  ;;  %153 = vmatprep.mubr.bf16.mxu1 %v323_v1  ;;  %v293_v2 = vld [vmem:[%s423_s1] ss:$8 sps:$4 sm:$0xff]   ;;  %v294_v3 = vld [vmem:[%s423_s1 + $0x14] ss:$8 sps:$4 sm:$0xff]  }
   0x2   :  { %101 = vmatprep.subr.bf16.mxu0 %v291_v0  ;;  %282 = vmatprep.subr.bf16.mxu1 %v291_v0  ;;  %v296_v4 = vld [vmem:[%s423_s1 + $0x10] ss:$8 sps:$4 sm:$0xff]   ;;  %v297_v5 = vld [vmem:[%s423_s1 + $0x24] ss:$8 sps:$4 sm:$0xff]   ;;  %v299_v6 = vld [vmem:[%s423_s1 + $0x20] ss:$8 sps:$4 sm:$0xff]  }
   0x3   :  { %102 = vmatpush1.bf16.msra.mxu0 %v293_v2  ;;  %286 = vmatpush1.bf16.msra.mxu1 %v293_v2  ;;  %v300_v7 = vld [vmem:[%s423_s1 + $0x34] ss:$8 sps:$4 sm:$0xff]   ;;  %v302_v8 = vld [vmem:[%s423_s1 + $0x30] ss:$8 sps:$4 sm:$0xff]   ;;  %v303_v9 = vld [vmem:[%s424_s0] sm:$0xff]  }
   0x4   :  { %103 = vmatprep.subr.bf16.mxu0 %v294_v3  ;;  %283 = vmatprep.subr.bf16.mxu1 %v294_v3  ;;  %v304_v10 = vld [vmem:[%s424_s0 + $0x10] sm:$0xff]   ;;  %v305_v11 = vld [vmem:[%s424_s0 + $0x8] sm:$0xff]   ;;  %v306_v12 = vld [vmem:[%s424_s0 + $0x18] sm:$0xff]  }
   0x7   :  { %104 = vmatpush1.bf16.msra.mxu0 %v296_v4  ;;  %287 = vmatpush1.bf16.msra.mxu1 %v296_v4 }
   0x8   :  { %105 = vmatprep.subr.bf16.mxu0 %v297_v5  ;;  %284 = vmatprep.subr.bf16.mxu1 %v297_v5 }
   0xb   :  { %106 = vmatpush1.bf16.msra.mxu0 %v299_v6  ;;  %288 = vmatpush1.bf16.msra.mxu1 %v299_v6 }
   0xc   :  { %107 = vmatprep.subr.bf16.mxu0 %v300_v7  ;;  %285 = vmatprep.subr.bf16.mxu1 %v300_v7 }
   0xf   :  { %108 = vmatpush1.bf16.msra.mxu0 %v302_v8  ;;  %289 = vmatpush1.bf16.msra.mxu1 %v302_v8 }
  0x12   :  { %278 = vmatmul.mubr.msk.bf16.vlgmr.msra.gmra.mrb[0].mxu0 %vm88_vm0, %v303_v9  ;;  %280 = vmatmul.mubr.msk.bf16.vlgmr.msra.gmra.mrb[0].mxu1 %vm88_vm0, %v304_v10 }
  0x13   :  { %143 = vmatprep.mubr.bf16.mxu0 %v323_v1  ;;  %163 = vmatprep.mubr.bf16.mxu1 %v323_v1 }
  0x1a   :  { %279 = vmatmul.mubr.msk.bf16.gmra.mrb[4].mxu0 %vm88_vm0, %v305_v11  ;;  %281 = vmatmul.mubr.msk.bf16.gmra.mrb[4].mxu1 %vm88_vm0, %v306_v12 }
  0xe5   :  { %v135_v13 = vpop.f32.mrb[0].mxu0  ;;  %v155_v14 = vpop.f32.mrb[0].mxu1 }
  0xe6   :  { %v174_v15 = vmul.f32 %v135_v13, %v135_v13  ;;  %v178_v16 = vmul.f32 %v155_v14, %v155_v14  ;;  %v137_v17 = vpop.f32.mrb[1].mxu0  ;;  %v157_v18 = vpop.f32.mrb[1].mxu1 }
  0xe7   :  { %v182_v19 = vmul.f32 %v137_v17, %v137_v17  ;;  %v186_v20 = vmul.f32 %v157_v18, %v157_v18  ;;  %v139_v21 = vpop.f32.mrb[2].mxu0  ;;  %v159_v22 = vpop.f32.mrb[2].mxu1 }
  0xe8   :  { %v175_v23 = vmul.f32 %v139_v21, %v139_v21  ;;  %v179_v24 = vmul.f32 %v159_v22, %v159_v22  ;;  %v141_v25 = vpop.f32.mrb[3].mxu0  ;;  %v161_v26 = vpop.f32.mrb[3].mxu1 }
  0xe9   :  { %v190_v27 = vadd.f32 %v182_v19, %v174_v15  ;;  %v194_v28 = vadd.f32 %v186_v20, %v178_v16  ;;  %v183_v29 = vmul.f32 %v141_v25, %v141_v25  ;;  %v187_v30 = vmul.f32 %v161_v26, %v161_v26 }
  0xeb   :  { %307 = vrsqrt.f32 %v190_v27  ;;  %v191_v31 = vadd.f32 %v183_v29, %v175_v23  ;;  %v195_v32 = vadd.f32 %v187_v30, %v179_v24  ;;  %vm200_vm1 = vcmp.eq.f32.partialorder %v190_v27, inf }
  0xec   :  { %309 = vrsqrt.f32 %v194_v28  ;;  %vm202_vm2 = vcmp.eq.f32.partialorder %v190_v27, 0.0  ;;  %v203_v56 = vand.u32 2147483648, %v190_v27  ;;  %vm228_vm3 = vcmp.eq.f32.partialorder %v194_v28, inf }
  0xed   :  { %v145_v33 = vpop.f32.mrb[4].mxu0  ;;  %v165_v34 = vpop.f32.mrb[4].mxu1  ;;  %311 = vrsqrt.f32 %v191_v31  ;;  %v231_v59 = vand.u32 2147483648, %v194_v28  ;;  %vm230_vm4 = vcmp.eq.f32.partialorder %v194_v28, 0.0  ;;  %vm207_vm5 = vcmp.eq.f32.partialorder %v191_v31, inf }
  0xee   :  { %v147_v35 = vpop.f32.mrb[5].mxu0  ;;  %v167_v36 = vpop.f32.mrb[5].mxu1  ;;  %v176_v37 = vmul.f32 %v145_v33, %v145_v33  ;;  %v180_v38 = vmul.f32 %v165_v34, %v165_v34  ;;  %313 = vrsqrt.f32 %v195_v32  ;;  %v210_v2 = vand.u32 2147483648, %v191_v31 }
  0xef   :  { %v149_v39 = vpop.f32.mrb[6].mxu0  ;;  %v169_v40 = vpop.f32.mrb[6].mxu1  ;;  %v184_v43 = vmul.f32 %v147_v35, %v147_v35  ;;  %v188_v44 = vmul.f32 %v167_v36, %v167_v36  ;;  %vm209_vm6 = vcmp.eq.f32.partialorder %v191_v31, 0.0  ;;  %vm235_vm7 = vcmp.eq.f32.partialorder %v195_v32, inf }
  0xf0   :  { %v151_v41 = vpop.f32.mrb[7].mxu0  ;;  %v171_v42 = vpop.f32.mrb[7].mxu1  ;;  %v177_v45 = vmul.f32 %v149_v39, %v149_v39  ;;  %v181_v46 = vmul.f32 %v169_v40, %v169_v40  ;;  %v238_v5 = vand.u32 2147483648, %v195_v32  ;;  %vm237_vm8 = vcmp.eq.f32.partialorder %v195_v32, 0.0 }
  0xf1   :  { %v185_v47 = vmul.f32 %v151_v41, %v151_v41  ;;  %v189_v48 = vmul.f32 %v171_v42, %v171_v42  ;;  %v192_v49 = vadd.f32 %v184_v43, %v176_v37  ;;  %v375_v50 = vadd.f32 %v188_v44, %v180_v38 }
  0xf3   :  { %v377_v51 = vadd.f32 %v185_v47, %v177_v45  ;;  %v379_v52 = vadd.f32 %v189_v48, %v181_v46  ;;  %315 = vrsqrt.f32 %v192_v49  ;;  %vm214_vm9 = vcmp.eq.f32.partialorder %v192_v49, inf }
  0xf4   :  { %317 = vrsqrt.f32 %v375_v50  ;;  %vm216_vm10 = vcmp.eq.f32.partialorder %v192_v49, 0.0  ;;  %v217_v12 = vand.u32 2147483648, %v192_v49  ;;  %vm242_vm11 = vcmp.eq.f32.partialorder %v375_v50, inf }
  0xf5   :  { %v308_v53 = vpop.eup %307  ;;  %319 = vrsqrt.f32 %v377_v51  ;;  %vm244_vm12 = vcmp.eq.f32.partialorder %v375_v50, 0.0  ;;  %v245_v15 = vand.u32 2147483648, %v375_v50  ;;  %vm221_vm13 = vcmp.eq.f32.partialorder %v377_v51, inf }
  0xf6   :  { %v310_v54 = vpop.eup %309  ;;  %v199_v55 = vmul.f32 %v308_v53, %v190_v27  ;;  %321 = vrsqrt.f32 %v379_v52  ;;  %vm223_vm14 = vcmp.eq.f32.partialorder %v377_v51, 0.0  ;;  %v224_v21 = vand.u32 2147483648, %v377_v51 }
  0xf7   :  { %v227_v57 = vmul.f32 %v310_v54, %v194_v28  ;;  %v312_v60 = vpop.eup %311  ;;  %vm249_vm15 = vcmp.eq.f32.partialorder %v379_v52, inf  ;;  %v252_v25 = vand.u32 2147483648, %v379_v52  ;;  %vm251_vm0 = vcmp.eq.f32.partialorder %v379_v52, 0.0 }
  0xf8   :  { %v201_v58 = vsel %vm200_vm1, %v190_v27, %v199_v55  ;;  %v314_v63 = vpop.eup %313  ;;  %v206_v1 = vmul.f32 %v312_v60, %v191_v31 }
  0xf9   :  { %v204_v61 = vsel %vm202_vm2, %v203_v56, %v201_v58  ;;  %v229_v62 = vsel %vm228_vm3, %v194_v28, %v227_v57  ;;  %v234_v3 = vmul.f32 %v314_v63, %v195_v32 }
  0xfa   :  { %254 = vst [vmem:[%s425_s2] sm:$0xff] %v204_v61  ;;  %v232_v0 = vsel %vm230_vm4, %v231_v59, %v229_v62  ;;  %v208_v4 = vsel %vm207_vm5, %v191_v31, %v206_v1 }
  0xfb   :  { %258 = vst [vmem:[%s425_s2 + $0x20] sm:$0xff] %v232_v0  ;;  %v211_v6 = vsel %vm209_vm6, %v210_v2, %v208_v4  ;;  %v236_v7 = vsel %vm235_vm7, %v195_v32, %v234_v3 }
  0xfc   :  { %255 = vst [vmem:[%s425_s2 + $0x8] sm:$0xff] %v211_v6  ;;  %v239_v8 = vsel %vm237_vm8, %v238_v5, %v236_v7 }
  0xfd   :  { %v316_v9 = vpop.eup %315  ;;  %259 = vst [vmem:[%s425_s2 + $0x28] sm:$0xff] %v239_v8 }
  0xfe   :  { %v318_v10 = vpop.eup %317  ;;  %v213_v11 = vmul.f32 %v316_v9, %v192_v49 }
  0xff   :  { %v320_v13 = vpop.eup %319  ;;  %v241_v14 = vmul.f32 %v318_v10, %v375_v50 }
 0x100   :  { %v322_v16 = vpop.eup %321  ;;  %v215_v17 = vsel %vm214_vm9, %v192_v49, %v213_v11  ;;  %v220_v18 = vmul.f32 %v320_v13, %v377_v51 }
 0x101   :  { %v218_v19 = vsel %vm216_vm10, %v217_v12, %v215_v17  ;;  %v243_v20 = vsel %vm242_vm11, %v375_v50, %v241_v14  ;;  %v248_v22 = vmul.f32 %v322_v16, %v379_v52 }
 0x102   :  { %256 = vst [vmem:[%s425_s2 + $0x10] sm:$0xff] %v218_v19  ;;  %v246_v23 = vsel %vm244_vm12, %v245_v15, %v243_v20  ;;  %v222_v24 = vsel %vm221_vm13, %v377_v51, %v220_v18 }
 0x103   :  { %260 = vst [vmem:[%s425_s2 + $0x30] sm:$0xff] %v246_v23  ;;  %v225_v26 = vsel %vm223_vm14, %v224_v21, %v222_v24  ;;  %v250_v27 = vsel %vm249_vm15, %v379_v52, %v248_v22 }
 0x104   :  { %257 = vst [vmem:[%s425_s2 + $0x18] sm:$0xff] %v225_v26  ;;  %v253_v28 = vsel %vm251_vm0, %v252_v25, %v250_v27 }
 0x105   :  { %261 = vst [vmem:[%s425_s2 + $0x38] sm:$0xff] %v253_v28 }

// kernel: forward.35
= control target key start
LH: loop header
LB: loop body
LE: loop exit
PB: predicated region body
PF: predicated region fallthrough
CT: control target
= control target key end

     0   :  { %v481_v1 = vmov 0   ;;  %vm92_vm0 = vcmask 261120   ;;  %s701_s1 = inlined_call_operand.vmem [shape: bf16[32,256], index: 1, kind: input, shape index: {}]   ;;  %s702_s0 = inlined_call_operand.vmem [shape: bf16[128,32], index: 0, kind: input, shape index: {}]   ;;  %s703_s2 = inlined_call_operand.vmem [shape: f32[128,128], index: 2, kind: output, shape index: {}]  }
   0x1   :  { %v435_v0 = vld [vmem:[%s701_s1 + $0x4] ss:$8 sps:$4 sm:$0xff]   ;;  %149 = vmatprep.mubr.bf16.mxu0 %v481_v1  ;;  %189 = vmatprep.mubr.bf16.mxu1 %v481_v1  ;;  %v437_v2 = vld [vmem:[%s701_s1] ss:$8 sps:$4 sm:$0xff]   ;;  %v438_v3 = vld [vmem:[%s701_s1 + $0x14] ss:$8 sps:$4 sm:$0xff]  }
   0x2   :  { %117 = vmatprep.subr.bf16.mxu0 %v435_v0  ;;  %430 = vmatprep.subr.bf16.mxu1 %v435_v0  ;;  %v440_v4 = vld [vmem:[%s701_s1 + $0x10] ss:$8 sps:$4 sm:$0xff]   ;;  %v441_v5 = vld [vmem:[%s702_s0] sm:$0xff]   ;;  %v443_v7 = vld [vmem:[%s702_s0 + $0x8] sm:$0xff]  }
   0x3   :  { %118 = vmatpush1.bf16.msra.mxu0 %v437_v2  ;;  %432 = vmatpush1.bf16.msra.mxu1 %v437_v2  ;;  %v442_v6 = vld [vmem:[%s702_s0 + $0x20] sm:$0xff]   ;;  %v444_v8 = vld [vmem:[%s702_s0 + $0x28] sm:$0xff]   ;;  %v445_v9 = vld [vmem:[%s702_s0 + $0x10] sm:$0xff]  }
   0x4   :  { %119 = vmatprep.subr.bf16.mxu0 %v438_v3  ;;  %431 = vmatprep.subr.bf16.mxu1 %v438_v3  ;;  %v446_v10 = vld [vmem:[%s702_s0 + $0x30] sm:$0xff]   ;;  %v447_v11 = vld [vmem:[%s702_s0 + $0x18] sm:$0xff]  }
   0x5   :  { %v448_v12 = vld [vmem:[%s702_s0 + $0x38] sm:$0xff]  }
   0x7   :  { %120 = vmatpush1.bf16.msra.mxu0 %v440_v4  ;;  %433 = vmatpush1.bf16.msra.mxu1 %v440_v4 }
   0xa   :  { %422 = vmatmul.mubr.msk.bf16.vlgmr.msra.gmra.mrb[0].mxu0 %vm92_vm0, %v441_v5  ;;  %426 = vmatmul.mubr.msk.bf16.vlgmr.msra.gmra.mrb[0].mxu1 %vm92_vm0, %v442_v6 }
   0xb   :  { %159 = vmatprep.mubr.bf16.mxu0 %v481_v1  ;;  %199 = vmatprep.mubr.bf16.mxu1 %v481_v1 }
  0x12   :  { %423 = vmatmul.mubr.msk.bf16.gmra.mrb[4].mxu0 %vm92_vm0, %v443_v7  ;;  %427 = vmatmul.mubr.msk.bf16.gmra.mrb[4].mxu1 %vm92_vm0, %v444_v8 }
  0x13   :  { %169 = vmatprep.mubr.bf16.mxu0 %v481_v1  ;;  %209 = vmatprep.mubr.bf16.mxu1 %v481_v1 }
  0x1a   :  { %424 = vmatmul.mubr.msk.bf16.gmra.mrb[8].mxu0 %vm92_vm0, %v445_v9  ;;  %428 = vmatmul.mubr.msk.bf16.gmra.mrb[8].mxu1 %vm92_vm0, %v446_v10 }
  0x1b   :  { %179 = vmatprep.mubr.bf16.mxu0 %v481_v1  ;;  %219 = vmatprep.mubr.bf16.mxu1 %v481_v1 }
  0x22   :  { %425 = vmatmul.mubr.msk.bf16.gmra.mrb[12].mxu0 %vm92_vm0, %v447_v11  ;;  %429 = vmatmul.mubr.msk.bf16.gmra.mrb[12].mxu1 %vm92_vm0, %v448_v12 }
  0xdd   :  { %v151_v13 = vpop.f32.mrb[0].mxu0  ;;  %v191_v14 = vpop.f32.mrb[0].mxu1 }
  0xde   :  { %v230_v15 = vmul.f32 %v151_v13, %v151_v13  ;;  %v238_v16 = vmul.f32 %v191_v14, %v191_v14  ;;  %v153_v17 = vpop.f32.mrb[1].mxu0  ;;  %v193_v18 = vpop.f32.mrb[1].mxu1 }
  0xdf   :  { %v246_v19 = vmul.f32 %v153_v17, %v153_v17  ;;  %v254_v20 = vmul.f32 %v193_v18, %v193_v18  ;;  %v155_v21 = vpop.f32.mrb[2].mxu0  ;;  %v195_v22 = vpop.f32.mrb[2].mxu1 }
  0xe0   :  { %v231_v23 = vmul.f32 %v155_v21, %v155_v21  ;;  %v239_v24 = vmul.f32 %v195_v22, %v195_v22  ;;  %v157_v25 = vpop.f32.mrb[3].mxu0  ;;  %v197_v26 = vpop.f32.mrb[3].mxu1 }
  0xe1   :  { %v262_v27 = vadd.f32 %v246_v19, %v230_v15  ;;  %v541_v28 = vadd.f32 %v254_v20, %v238_v16  ;;  %v247_v29 = vmul.f32 %v157_v25, %v157_v25  ;;  %v255_v30 = vmul.f32 %v197_v26, %v197_v26 }
  0xe3   :  { %449 = vrsqrt.f32 %v262_v27  ;;  %v544_v31 = vadd.f32 %v247_v29, %v231_v23  ;;  %v546_v32 = vadd.f32 %v255_v30, %v239_v24  ;;  %vm280_vm1 = vcmp.eq.f32.partialorder %v262_v27, inf }
  0xe4   :  { %451 = vrsqrt.f32 %v541_v28  ;;  %vm282_vm2 = vcmp.eq.f32.partialorder %v262_v27, 0.0  ;;  %v283_v54 = vand.u32 2147483648, %v262_v27  ;;  %vm336_vm3 = vcmp.eq.f32.partialorder %v541_v28, inf }
  0xe5   :  { %v161_v33 = vpop.f32.mrb[4].mxu0  ;;  %v201_v34 = vpop.f32.mrb[4].mxu1  ;;  %453 = vrsqrt.f32 %v544_v31  ;;  %vm338_vm4 = vcmp.eq.f32.partialorder %v541_v28, 0.0  ;;  %v339_v59 = vand.u32 2147483648, %v541_v28  ;;  %vm287_vm5 = vcmp.eq.f32.partialorder %v544_v31, inf }
  0xe6   :  { %v163_v35 = vpop.f32.mrb[5].mxu0  ;;  %v203_v36 = vpop.f32.mrb[5].mxu1  ;;  %v232_v37 = vmul.f32 %v161_v33, %v161_v33  ;;  %v240_v38 = vmul.f32 %v201_v34, %v201_v34  ;;  %455 = vrsqrt.f32 %v546_v32  ;;  %vm289_vm6 = vcmp.eq.f32.partialorder %v544_v31, 0.0 }
  0xe7   :  { %v165_v39 = vpop.f32.mrb[6].mxu0  ;;  %v205_v40 = vpop.f32.mrb[6].mxu1  ;;  %v248_v43 = vmul.f32 %v163_v35, %v163_v35  ;;  %v256_v44 = vmul.f32 %v203_v36, %v203_v36  ;;  %v290_v63 = vand.u32 2147483648, %v544_v31  ;;  %vm343_vm7 = vcmp.eq.f32.partialorder %v546_v32, inf }
  0xe8   :  { %v167_v41 = vpop.f32.mrb[7].mxu0  ;;  %v207_v42 = vpop.f32.mrb[7].mxu1  ;;  %v233_v45 = vmul.f32 %v165_v39, %v165_v39  ;;  %v241_v46 = vmul.f32 %v205_v40, %v205_v40  ;;  %vm345_vm8 = vcmp.eq.f32.partialorder %v546_v32, 0.0  ;;  %v346_v8 = vand.u32 2147483648, %v546_v32 }
  0xe9   :  { %v249_v47 = vmul.f32 %v167_v41, %v167_v41  ;;  %v257_v48 = vmul.f32 %v207_v42, %v207_v42  ;;  %v550_v49 = vadd.f32 %v248_v43, %v232_v37  ;;  %v552_v50 = vadd.f32 %v256_v44, %v240_v38 }
  0xeb   :  { %v554_v51 = vadd.f32 %v249_v47, %v233_v45  ;;  %v556_v52 = vadd.f32 %v257_v48, %v241_v46  ;;  %457 = vrsqrt.f32 %v550_v49  ;;  %vm294_vm9 = vcmp.eq.f32.partialorder %v550_v49, inf }
  0xec   :  { %459 = vrsqrt.f32 %v552_v50  ;;  %vm296_vm10 = vcmp.eq.f32.partialorder %v550_v49, 0.0  ;;  %v297_v18 = vand.u32 2147483648, %v550_v49  ;;  %vm350_vm11 = vcmp.eq.f32.partialorder %v552_v50, inf }
  0xed   :  { %v450_v53 = vpop.eup %449  ;;  %v171_v55 = vpop.f32.mrb[8].mxu0  ;;  %461 = vrsqrt.f32 %v554_v51  ;;  %vm352_vm12 = vcmp.eq.f32.partialorder %v552_v50, 0.0  ;;  %v353_v33 = vand.u32 2147483648, %v552_v50  ;;  %vm301_vm13 = vcmp.eq.f32.partialorder %v554_v51, inf }
  0xee   :  { %v211_v56 = vpop.f32.mrb[8].mxu1  ;;  %v452_v57 = vpop.eup %451  ;;  %v279_v58 = vmul.f32 %v450_v53, %v262_v27  ;;  %463 = vrsqrt.f32 %v556_v52  ;;  %v234_v12 = vmul.f32 %v171_v55, %v171_v55  ;;  %vm303_vm14 = vcmp.eq.f32.partialorder %v554_v51, 0.0 }
  0xef   :  { %v173_v60 = vpop.f32.mrb[9].mxu0  ;;  %v213_v61 = vpop.f32.mrb[9].mxu1  ;;  %v335_v62 = vmul.f32 %v452_v57, %v541_v28  ;;  %v242_v14 = vmul.f32 %v211_v56, %v211_v56  ;;  %v304_v43 = vand.u32 2147483648, %v554_v51  ;;  %vm357_vm15 = vcmp.eq.f32.partialorder %v556_v52, inf }
  0xf0   :  { %v175_v0 = vpop.f32.mrb[10].mxu0  ;;  %v215_v1 = vpop.f32.mrb[10].mxu1  ;;  %v281_v2 = vsel %vm280_vm1, %v262_v27, %v279_v58  ;;  %v250_v15 = vmul.f32 %v173_v60, %v173_v60  ;;  %v258_v16 = vmul.f32 %v213_v61, %v213_v61  ;;  %vm359_vm0 = vcmp.eq.f32.partialorder %v556_v52, 0.0 }
  0xf1   :  { %v177_v3 = vpop.f32.mrb[11].mxu0  ;;  %v217_v4 = vpop.f32.mrb[11].mxu1  ;;  %v284_v6 = vsel %vm282_vm2, %v283_v54, %v281_v2  ;;  %v337_v7 = vsel %vm336_vm3, %v541_v28, %v335_v62  ;;  %v235_v19 = vmul.f32 %v175_v0, %v175_v0  ;;  %v243_v34 = vmul.f32 %v215_v1, %v215_v1 }
  0xf2   :  { %v454_v5 = vpop.eup %453  ;;  %390 = vst [vmem:[%s703_s2] sm:$0xff] %v284_v6  ;;  %v340_v10 = vsel %vm338_vm4, %v339_v59, %v337_v7  ;;  %v251_v20 = vmul.f32 %v177_v3, %v177_v3  ;;  %v598_v23 = vadd.f32 %v250_v15, %v234_v12  ;;  %v600_v24 = vadd.f32 %v258_v16, %v242_v14 }
  0xf3   :  { %v456_v9 = vpop.eup %455  ;;  %v286_v11 = vmul.f32 %v454_v5, %v544_v31  ;;  %398 = vst [vmem:[%s703_s2 + $0x40] sm:$0xff] %v340_v10 }
  0xf4   :  { %v342_v13 = vmul.f32 %v456_v9, %v546_v32  ;;  %v609_v28 = vadd.f32 %v251_v20, %v235_v19  ;;  %465 = vrsqrt.f32 %v598_v23  ;;  %vm308_vm1 = vcmp.eq.f32.partialorder %v598_v23, inf }
  0xf5   :  { %v288_v17 = vsel %vm287_vm5, %v544_v31, %v286_v11  ;;  %v181_v25 = vpop.f32.mrb[12].mxu0  ;;  %v221_v26 = vpop.f32.mrb[12].mxu1  ;;  %467 = vrsqrt.f32 %v600_v24  ;;  %vm310_vm2 = vcmp.eq.f32.partialorder %v598_v23, 0.0  ;;  %v311_v5 = vand.u32 2147483648, %v598_v23 }
  0xf6   :  { %v291_v21 = vsel %vm289_vm6, %v290_v63, %v288_v17  ;;  %v344_v22 = vsel %vm343_vm7, %v546_v32, %v342_v13  ;;  %v183_v29 = vpop.f32.mrb[13].mxu0  ;;  %v223_v30 = vpop.f32.mrb[13].mxu1  ;;  %v259_v32 = vmul.f32 %v217_v4, %v217_v4  ;;  %469 = vrsqrt.f32 %v609_v28 }
  0xf7   :  { %391 = vst [vmem:[%s703_s2 + $0x8] sm:$0xff] %v291_v21  ;;  %v347_v27 = vsel %vm345_vm8, %v346_v8, %v344_v22  ;;  %v458_v31 = vpop.eup %457  ;;  %v185_v35 = vpop.f32.mrb[14].mxu0  ;;  %v236_v47 = vmul.f32 %v181_v25, %v181_v25  ;;  %v252_v58 = vmul.f32 %v183_v29, %v183_v29  ;;  %vm364_vm3 = vcmp.eq.f32.partialorder %v600_v24, inf }
  0xf8   :  { %399 = vst [vmem:[%s703_s2 + $0x48] sm:$0xff] %v347_v27  ;;  %v225_v36 = vpop.f32.mrb[14].mxu1  ;;  %v460_v37 = vpop.eup %459  ;;  %v293_v38 = vmul.f32 %v458_v31, %v550_v49  ;;  %v275_v55 = vadd.f32 %v259_v32, %v243_v34  ;;  %v237_v63 = vmul.f32 %v185_v35, %v185_v35  ;;  %vm366_vm4 = vcmp.eq.f32.partialorder %v600_v24, 0.0 }
  0xf9   :  { %v187_v39 = vpop.f32.mrb[15].mxu0  ;;  %v227_v40 = vpop.f32.mrb[15].mxu1  ;;  %v349_v42 = vmul.f32 %v460_v37, %v552_v50  ;;  %v268_v62 = vadd.f32 %v252_v58, %v236_v47  ;;  %v245_v6 = vmul.f32 %v225_v36, %v225_v36  ;;  %v367_v11 = vand.u32 2147483648, %v600_v24 }
  0xfa   :  { %v462_v41 = vpop.eup %461  ;;  %v295_v45 = vsel %vm294_vm9, %v550_v49, %v293_v38  ;;  %v360_v49 = vand.u32 2147483648, %v556_v52  ;;  %471 = vrsqrt.f32 %v275_v55  ;;  %v253_v0 = vmul.f32 %v187_v39, %v187_v39 }
  0xfb   :  { %v464_v44 = vpop.eup %463  ;;  %v300_v46 = vmul.f32 %v462_v41, %v554_v51  ;;  %v298_v48 = vsel %vm296_vm10, %v297_v18, %v295_v45  ;;  %v351_v53 = vsel %vm350_vm11, %v552_v50, %v349_v42  ;;  %v244_v50 = vmul.f32 %v221_v26, %v221_v26 }
  0xfc   :  { %v356_v54 = vmul.f32 %v464_v44, %v556_v52  ;;  %392 = vst [vmem:[%s703_s2 + $0x10] sm:$0xff] %v298_v48  ;;  %v354_v56 = vsel %vm352_vm12, %v353_v33, %v351_v53  ;;  %473 = vrsqrt.f32 %v268_v62  ;;  %v269_v3 = vadd.f32 %v253_v0, %v237_v63 }
  0xfd   :  { %v302_v57 = vsel %vm301_vm13, %v554_v51, %v300_v46  ;;  %400 = vst [vmem:[%s703_s2 + $0x50] sm:$0xff] %v354_v56  ;;  %v260_v51 = vmul.f32 %v223_v30, %v223_v30  ;;  %v261_v7 = vmul.f32 %v227_v40, %v227_v40  ;;  %vm315_vm5 = vcmp.eq.f32.partialorder %v609_v28, inf }
  0xfe   :  { %v305_v59 = vsel %vm303_vm14, %v304_v43, %v302_v57  ;;  %v358_v60 = vsel %vm357_vm15, %v556_v52, %v356_v54  ;;  %v466_v1 = vpop.eup %465  ;;  %v318_v15 = vand.u32 2147483648, %v609_v28  ;;  %vm317_vm6 = vcmp.eq.f32.partialorder %v609_v28, 0.0 }
  0xff   :  { %393 = vst [vmem:[%s703_s2 + $0x18] sm:$0xff] %v305_v59  ;;  %v361_v61 = vsel %vm359_vm0, %v360_v49, %v358_v60  ;;  %v276_v2 = vadd.f32 %v260_v51, %v244_v50  ;;  %v468_v4 = vpop.eup %467  ;;  %v307_v52 = vmul.f32 %v466_v1, %v598_v23  ;;  %v277_v18 = vadd.f32 %v261_v7, %v245_v6 }
 0x100   :  { %401 = vst [vmem:[%s703_s2 + $0x58] sm:$0xff] %v361_v61  ;;  %v470_v8 = vpop.eup %469  ;;  %v363_v9 = vmul.f32 %v468_v4, %v600_v24  ;;  %vm371_vm7 = vcmp.eq.f32.partialorder %v275_v55, inf  ;;  %v374_v22 = vand.u32 2147483648, %v275_v55  ;;  %vm373_vm8 = vcmp.eq.f32.partialorder %v275_v55, 0.0 }
 0x101   :  { %475 = vrsqrt.f32 %v276_v2  ;;  %v309_v10 = vsel %vm308_vm1, %v598_v23, %v307_v52  ;;  %v314_v12 = vmul.f32 %v470_v8, %v609_v28  ;;  %vm322_vm9 = vcmp.eq.f32.partialorder %v268_v62, inf }
 0x102   :  { %477 = vrsqrt.f32 %v269_v3  ;;  %v312_v13 = vsel %vm310_vm2, %v311_v5, %v309_v10  ;;  %v365_v14 = vsel %vm364_vm3, %v600_v24, %v363_v9  ;;  %v325_v27 = vand.u32 2147483648, %v268_v62 }
 0x103   :  { %394 = vst [vmem:[%s703_s2 + $0x20] sm:$0xff] %v312_v13  ;;  %v368_v16 = vsel %vm366_vm4, %v367_v11, %v365_v14  ;;  %v316_v17 = vsel %vm315_vm5, %v609_v28, %v314_v12  ;;  %479 = vrsqrt.f32 %v277_v18  ;;  %vm324_vm10 = vcmp.eq.f32.partialorder %v268_v62, 0.0 }
 0x104   :  { %v472_v19 = vpop.eup %471  ;;  %402 = vst [vmem:[%s703_s2 + $0x60] sm:$0xff] %v368_v16  ;;  %v319_v20 = vsel %vm317_vm6, %v318_v15, %v316_v17  ;;  %vm378_vm11 = vcmp.eq.f32.partialorder %v276_v2, inf  ;;  %v381_v34 = vand.u32 2147483648, %v276_v2  ;;  %vm380_vm12 = vcmp.eq.f32.partialorder %v276_v2, 0.0 }
 0x105   :  { %395 = vst [vmem:[%s703_s2 + $0x28] sm:$0xff] %v319_v20  ;;  %v370_v21 = vmul.f32 %v472_v19, %v275_v55  ;;  %vm329_vm13 = vcmp.eq.f32.partialorder %v269_v3, inf  ;;  %v332_v36 = vand.u32 2147483648, %v269_v3  ;;  %vm331_vm14 = vcmp.eq.f32.partialorder %v269_v3, 0.0 }
 0x106   :  { %v474_v23 = vpop.eup %473  ;;  %vm385_vm15 = vcmp.eq.f32.partialorder %v277_v18, inf  ;;  %v388_v42 = vand.u32 2147483648, %v277_v18  ;;  %vm387_vm0 = vcmp.eq.f32.partialorder %v277_v18, 0.0 }
 0x107   :  { %v372_v24 = vsel %vm371_vm7, %v275_v55, %v370_v21  ;;  %v321_v26 = vmul.f32 %v474_v23, %v268_v62 }
 0x108   :  { %v375_v25 = vsel %vm373_vm8, %v374_v22, %v372_v24 }
 0x109   :  { %403 = vst [vmem:[%s703_s2 + $0x68] sm:$0xff] %v375_v25  ;;  %v323_v29 = vsel %vm322_vm9, %v268_v62, %v321_v26 }
 0x10a   :  { %v326_v31 = vsel %vm324_vm10, %v325_v27, %v323_v29 }
 0x10b   :  { %v476_v28 = vpop.eup %475  ;;  %396 = vst [vmem:[%s703_s2 + $0x30] sm:$0xff] %v326_v31 }
 0x10c   :  { %v478_v30 = vpop.eup %477  ;;  %v377_v33 = vmul.f32 %v476_v28, %v276_v2 }
 0x10d   :  { %v328_v32 = vmul.f32 %v478_v30, %v269_v3  ;;  %v480_v39 = vpop.eup %479 }
 0x10e   :  { %v379_v35 = vsel %vm378_vm11, %v276_v2, %v377_v33  ;;  %v384_v41 = vmul.f32 %v480_v39, %v277_v18 }
 0x10f   :  { %v382_v37 = vsel %vm380_vm12, %v381_v34, %v379_v35  ;;  %v330_v38 = vsel %vm329_vm13, %v269_v3, %v328_v32 }
 0x110   :  { %404 = vst [vmem:[%s703_s2 + $0x70] sm:$0xff] %v382_v37  ;;  %v333_v40 = vsel %vm331_vm14, %v332_v36, %v330_v38  ;;  %v386_v43 = vsel %vm385_vm15, %v277_v18, %v384_v41 }
 0x111   :  { %397 = vst [vmem:[%s703_s2 + $0x38] sm:$0xff] %v333_v40  ;;  %v389_v44 = vsel %vm387_vm0, %v388_v42, %v386_v43 }
 0x112   :  { %405 = vst [vmem:[%s703_s2 + $0x78] sm:$0xff] %v389_v44 }

// kernel: forward.22
= control target key start
LH: loop header
LB: loop body
LE: loop exit
PB: predicated region body
PF: predicated region fallthrough
CT: control target
= control target key end

     0   :  { %s495_s9 = smov 0   ;;  %s497_s10 = smov 0   ;;  %s550_s0 = inlined_call_operand.vmem [shape: bf16[8,32], index: 0, kind: input, shape index: {}]   ;;  %s551_s1 = inlined_call_operand.vmem [shape: bf16[32,2560], index: 1, kind: input, shape index: {}]   ;;  %s552_s2 = inlined_call_operand.vmem [shape: f32[8,2560], index: 2, kind: output, shape index: {}]  }
   0x1   :  { %s499_s11 = smov 0  }
   0x2 LB: > { %s394_s12 = sadd.s32 4294967295, %s477_s11   ;;  %s512_s13 = sadd.s32 1, %s477_s11   ;;  %s477_s11 = sphi %s499_s11, %s555_s11   ;;  %s473_s10 = sphi %s497_s10, %s554_s10   ;;  %s469_s9 = sphi %s495_s9, %s553_s9  }
   0x3   : > { %s37_s14 = ssub.s32 %s477_s11, %s512_s13  ;;  %s40_s15 = sadd.s32 1, %s473_s10 }
   0x4   : > { %p38_p0 = scmp.eq.s32.totalorder %s37_s14, 0  ;;  %p47_p1 = scmp.ne.s32.totalorder %s473_s10, %s469_s9 }
   0x5   : > { %p48_p2 = scmp.eq.s32.totalorder %s477_s11, 0  ;;  %p397_p4 = scmp.ge.s32.totalorder %s477_s11, 5 }
   0x6   : > { %s521_s16 = scalar_select %p38_p0, %s473_s10, %s40_s15  }
   0x7   : > { %p49_p3 = por %p48_p2, %p47_p1  ;;  %102 = sbr.rel (%p397_p4) target bundleno = 22 (0x16), region = 20 }
   0xe   : > { %105 = sbr.rel (!%p49_p3) target bundleno = 22 (0x16), region = 24  ;;  %s107_s17 = sand.u32 (%p49_p3), 1, %s473_s10  }
   0xf   : > { %s417_s18 = sshll.u32 (%p49_p3), %s477_s11, 4  ;;  %s398_s19 = sshll.u32 (%p49_p3), %s107_s17, 6 }
  0x10   : > { %s112_s22 = scalar_lea.vmem (%p49_p3), %s551_s1, %s417_s18  ;;  %s109_s23 = scalar_lea.vmem (%p49_p3), [#allocation2], %s398_s19 }
  0x11   : > { %v125_v0 = vld [vmem:[%s112_s22] sm:$0xff] (%p49_p3)  ;;  %v127_v1 = vld [vmem:[%s112_s22 + $0x8] sm:$0xff] (%p49_p3)  ;;  %v129_v2 = vld [vmem:[%s112_s22 + $0x50] sm:$0xff] (%p49_p3) }
  0x12   : > { %126 = vst [vmem:[%s109_s23] sm:$0xff] (%p49_p3), %v125_v0  ;;  %128 = vst [vmem:[%s109_s23 + $0x8] sm:$0xff] (%p49_p3), %v127_v1  ;;  %v131_v3 = vld [vmem:[%s112_s22 + $0x58] sm:$0xff] (%p49_p3)  ;;  %v133_v4 = vld [vmem:[%s112_s22 + $0xa0] sm:$0xff] (%p49_p3) }
  0x13   : > { %130 = vst [vmem:[%s109_s23 + $0x10] sm:$0xff] (%p49_p3), %v129_v2  ;;  %v135_v5 = vld [vmem:[%s112_s22 + $0xa8] sm:$0xff] (%p49_p3)  ;;  %132 = vst [vmem:[%s109_s23 + $0x18] sm:$0xff] (%p49_p3), %v131_v3  ;;  %v137_v6 = vld [vmem:[%s112_s22 + $0xf0] sm:$0xff] (%p49_p3) }
  0x14   : > { %134 = vst [vmem:[%s109_s23 + $0x20] sm:$0xff] (%p49_p3), %v133_v4  ;;  %136 = vst [vmem:[%s109_s23 + $0x28] sm:$0xff] (%p49_p3), %v135_v5  ;;  %v139_v7 = vld [vmem:[%s112_s22 + $0xf8] sm:$0xff] (%p49_p3) }
  0x15   : > { %138 = vst [vmem:[%s109_s23 + $0x30] sm:$0xff] %v137_v6  ;;  %140 = vst [vmem:[%s109_s23 + $0x38] sm:$0xff] %v139_v7 }
  0x16 PF: > { %p401_p5 = scmp.ge.s32.totalorder %s477_s11, 1  ;;  %p145_p6 = scmp.lt.s32.totalorder %s477_s11, 6 }
  0x18   : > { %p146_p7 = pnand %p401_p5, %p145_p6 }
  0x19   : > { %s152_s24 = sand.u32 (!%p146_p7), 1, %s469_s9   ;;  %v479_v8 = vmov (!%p146_p7), 0   ;;  %v181_v17 = vld [vmem:[%s550_s0] sm:$0xf] (!%p146_p7)  ;;  %vm230_vm0 = vcmask (!%p146_p7), 261120   ;;  %s403_s29 = sshll.u32 (!%p146_p7), %s394_s12, 2 }
  0x1a   : > { %149 = sbr.rel (%p146_p7) target bundleno = 256 (0x100), region = 47  ;;  %s402_s25 = sshll.u32 (!%p146_p7), %s152_s24, 6  ;;  %266 = vmatprep.mubr.bf16.mxu0 (!%p146_p7), %v479_v8  ;;  %307 = vmatprep.mubr.bf16.mxu1 (!%p146_p7), %v479_v8 }
  0x1b   : > { %s154_s26 = scalar_lea.vmem (!%p146_p7), [#allocation2], %s402_s25  ;;  %p175_p8 = scmp.lt.s32.totalorder (!%p146_p7), %s403_s29, 19 }
  0x1c   : > { %v443_v9 = vld [vmem:[%s154_s26 + $0x4] ss:$16 sps:$4 sm:$0xff] (!%p146_p7)   ;;  %v445_v10 = vld [vmem:[%s154_s26 + $0xc] ss:$16 sps:$4 sm:$0xff] (!%p146_p7)   ;;  %v447_v11 = vld [vmem:[%s154_s26] ss:$16 sps:$4 sm:$0xff] (!%p146_p7)  }
  0x1d   : > { %234 = vmatprep.subr.bf16.mxu0 (!%p146_p7), %v443_v9  ;;  %v448_v12 = vld [vmem:[%s154_s26 + $0x8] ss:$16 sps:$4 sm:$0xff] (!%p146_p7)   ;;  %275 = vmatprep.subr.bf16.mxu1 (!%p146_p7), %v445_v10  ;;  %v449_v13 = vld [vmem:[%s154_s26 + $0x24] ss:$16 sps:$4 sm:$0xff] (!%p146_p7)   ;;  %v451_v14 = vld [vmem:[%s154_s26 + $0x2c] ss:$16 sps:$4 sm:$0xff] (!%p146_p7)  }
  0x1e   : > { %235 = vmatpush1.bf16.msra.mxu0 (!%p146_p7), %v447_v11  ;;  %276 = vmatpush1.bf16.msra.mxu1 (!%p146_p7), %v448_v12  ;;  %v453_v15 = vld [vmem:[%s154_s26 + $0x20] ss:$16 sps:$4 sm:$0xff] (!%p146_p7)   ;;  %v454_v16 = vld [vmem:[%s154_s26 + $0x28] ss:$16 sps:$4 sm:$0xff] (!%p146_p7)  }
  0x1f   : > { %236 = vmatprep.subr.bf16.mxu0 (!%p146_p7), %v449_v13  ;;  %277 = vmatprep.subr.bf16.mxu1 (!%p146_p7), %v451_v14 }
  0x21   : > { %s557_s29 = smov (!%p175_p8, %s403_s29), 19 }
  0x22   : > { %237 = vmatpush1.bf16.msra.mxu0 %v453_v15  ;;  %278 = vmatpush1.bf16.msra.mxu1 %v454_v16  ;;  %s404_s30 = sshll.u32 %s557_s29, 3 }
  0x23   : > { %s178_s5 = scalar_lea.vmem %s552_s2, %s404_s30 }
  0x25   : > { %413 = vmatmul.mubr.msk.bf16.vlgmr.msra.gmra.mrb[0].mxu0 %vm230_vm0, %v181_v17  ;;  %414 = vmatmul.mubr.msk.bf16.vlgmr.msra.gmra.mrb[0].mxu1 %vm230_vm0, %v181_v17 }
  0xf8   : > { %v268_v18 = vpop.f32.mrb[0].mxu0  ;;  %v309_v19 = vpop.f32.mrb[0].mxu1 }
  0xf9   : > { %vm316_vm1 = vcmp.ge.f32.partialorder %v268_v18, 0.0  ;;  %v320_v20 = vmul.f32 0.1, %v268_v18  ;;  %vm318_vm2 = vcmp.ge.f32.partialorder %v309_v19, 0.0  ;;  %v322_v21 = vmul.f32 0.1, %v309_v19 }
  0xfa   : > { %v270_v22 = vpop.f32.mrb[1].mxu0  ;;  %v311_v23 = vpop.f32.mrb[1].mxu1 }
  0xfb   : > { %v324_v24 = vsel %vm316_vm1, %v268_v18, %v320_v20  ;;  %v326_v25 = vsel %vm318_vm2, %v309_v19, %v322_v21  ;;  %vm317_vm3 = vcmp.ge.f32.partialorder %v270_v22, 0.0  ;;  %v321_v26 = vmul.f32 0.1, %v270_v22  ;;  %v272_v27 = vpop.f32.mrb[2].mxu0  ;;  %v313_v28 = vpop.f32.mrb[2].mxu1 }
  0xfc   : > { %328 = vst [vmem:[%s178_s5] sm:$0xff] %v324_v24  ;;  %330 = vst [vmem:[%s178_s5 + $0x10] sm:$0xff] %v326_v25  ;;  %vm319_vm4 = vcmp.ge.f32.partialorder %v311_v23, 0.0  ;;  %v323_v29 = vmul.f32 0.1, %v311_v23  ;;  %v273_v30 = vpop.f32.mrb[3].mxu0  ;;  %v314_v31 = vpop.f32.mrb[3].mxu1 }
  0xfd   : > { %v325_v32 = vsel %vm317_vm3, %v270_v22, %v321_v26 }
  0xfe   : > { %329 = vst [vmem:[%s178_s5 + $0x8] sm:$0xff] %v325_v32  ;;  %v327_v33 = vsel %vm319_vm4, %v311_v23, %v323_v29 }
  0xff   : > { %331 = vst [vmem:[%s178_s5 + $0x18] sm:$0xff] %v327_v33 }
 0x100 PF: > { %p9_p9 = scmp.ge.s32.totalorder %s512_s13, 7   ;;  %s553_s9 = smov %s473_s10 }
 0x101   : > { %s554_s10 = smov %s521_s16  ;;  %s555_s11 = smov %s512_s13 }
 0x102   :  { %11 = sbr.rel (!%p9_p9) target bundleno = 2 (0x2), region = 86 }

// kernel: forward.37
= control target key start
LH: loop header
LB: loop body
LE: loop exit
PB: predicated region body
PF: predicated region fallthrough
CT: control target
= control target key end

     0   :  { %s1007_s9 = smov 0   ;;  %s1009_s10 = smov 0   ;;  %s1242_s0 = inlined_call_operand.vmem [shape: bf16[8,224], index: 0, kind: input, shape index: {}]   ;;  %s1243_s1 = inlined_call_operand.vmem [shape: bf16[224,1536], index: 1, kind: input, shape index: {}]   ;;  %s1244_s2 = inlined_call_operand.vmem [shape: f32[8,1536], index: 2, kind: output, shape index: {}]  }
   0x1   :  { %s1011_s11 = smov 0  }
   0x2 LB: > { %s784_s12 = sadd.s32 4294967295, %s990_s11   ;;  %s1024_s13 = sadd.s32 1, %s990_s11   ;;  %s990_s11 = sphi %s1011_s11, %s1247_s11   ;;  %s986_s10 = sphi %s1009_s10, %s1246_s10   ;;  %s982_s9 = sphi %s1007_s9, %s1245_s9  }
   0x3   : > { %s37_s14 = ssub.s32 %s990_s11, %s1024_s13  ;;  %s40_s15 = sadd.s32 1, %s986_s10 }
   0x4   : > { %p38_p0 = scmp.eq.s32.totalorder %s37_s14, 0  ;;  %p47_p1 = scmp.ne.s32.totalorder %s986_s10, %s982_s9 }
   0x5   : > { %p48_p2 = scmp.eq.s32.totalorder %s990_s11, 0  ;;  %p787_p4 = scmp.ge.s32.totalorder %s990_s11, 3 }
   0x6   : > { %s1033_s16 = scalar_select %p38_p0, %s986_s10, %s40_s15  }
   0x7   : > { %p49_p3 = por %p48_p2, %p47_p1  ;;  %102 = sbr.rel (%p787_p4) target bundleno = 47 (0x2f), region = 20 }
   0xe   : > { %105 = sbr.rel (!%p49_p3) target bundleno = 47 (0x2f), region = 24  ;;  %s107_s17 = sand.u32 (%p49_p3), 1, %s986_s10  }
   0xf   : > { %s855_s18 = sshll.u32 (%p49_p3), %s990_s11, 4  ;;  %s856_s19 = smul.u32 (%p49_p3), 448, %s107_s17 }
  0x10   : > { %s1041_s22 = scalar_lea.vmem (%p49_p3), %s1243_s1, %s855_s18 }
  0x11   : > { %v125_v0 = vld [vmem:[%s1041_s22] sm:$0xff] (%p49_p3)  ;;  %v127_v1 = vld [vmem:[%s1041_s22 + $0x8] sm:$0xff] (%p49_p3)  ;;  %v129_v2 = vld [vmem:[%s1041_s22 + $0x30] sm:$0xff] (%p49_p3)  ;;  %s1049_s23 = scalar_lea.vmem (%p49_p3), [#allocation2], %s856_s19 }
  0x12   : > { %v131_v3 = vld [vmem:[%s1041_s22 + $0x38] sm:$0xff] (%p49_p3)  ;;  %v133_v4 = vld [vmem:[%s1041_s22 + $0x60] sm:$0xff] (%p49_p3)  ;;  %v135_v5 = vld [vmem:[%s1041_s22 + $0x68] sm:$0xff] (%p49_p3)  ;;  %126 = vst [vmem:[%s1049_s23] sm:$0xff] (%p49_p3), %v125_v0 }
  0x13   : > { %128 = vst [vmem:[%s1049_s23 + $0x8] sm:$0xff] (%p49_p3), %v127_v1  ;;  %130 = vst [vmem:[%s1049_s23 + $0x10] sm:$0xff] (%p49_p3), %v129_v2  ;;  %v137_v6 = vld [vmem:[%s1041_s22 + $0x90] sm:$0xff] (%p49_p3)  ;;  %v139_v7 = vld [vmem:[%s1041_s22 + $0x98] sm:$0xff] (%p49_p3) }
  0x14   : > { %132 = vst [vmem:[%s1049_s23 + $0x18] sm:$0xff] (%p49_p3), %v131_v3  ;;  %134 = vst [vmem:[%s1049_s23 + $0x20] sm:$0xff] (%p49_p3), %v133_v4  ;;  %v141_v8 = vld [vmem:[%s1041_s22 + $0xc0] sm:$0xff] (%p49_p3)  ;;  %v143_v9 = vld [vmem:[%s1041_s22 + $0xc8] sm:$0xff] (%p49_p3) }
  0x15   : > { %136 = vst [vmem:[%s1049_s23 + $0x28] sm:$0xff] %v135_v5  ;;  %138 = vst [vmem:[%s1049_s23 + $0x30] sm:$0xff] %v137_v6  ;;  %v145_v10 = vld [vmem:[%s1041_s22 + $0xf0] sm:$0xff]  ;;  %v147_v11 = vld [vmem:[%s1041_s22 + $0xf8] sm:$0xff] }
  0x16   : > { %140 = vst [vmem:[%s1049_s23 + $0x38] sm:$0xff] %v139_v7  ;;  %142 = vst [vmem:[%s1049_s23 + $0x40] sm:$0xff] %v141_v8  ;;  %v149_v12 = vld [vmem:[%s1041_s22 + $0x120] sm:$0xff]  ;;  %v151_v13 = vld [vmem:[%s1041_s22 + $0x128] sm:$0xff] }
  0x17   : > { %144 = vst [vmem:[%s1049_s23 + $0x48] sm:$0xff] %v143_v9  ;;  %146 = vst [vmem:[%s1049_s23 + $0x50] sm:$0xff] %v145_v10  ;;  %v153_v14 = vld [vmem:[%s1041_s22 + $0x150] sm:$0xff]  ;;  %v155_v15 = vld [vmem:[%s1041_s22 + $0x158] sm:$0xff] }
  0x18   : > { %148 = vst [vmem:[%s1049_s23 + $0x58] sm:$0xff] %v147_v11  ;;  %150 = vst [vmem:[%s1049_s23 + $0x60] sm:$0xff] %v149_v12  ;;  %v157_v16 = vld [vmem:[%s1041_s22 + $0x180] sm:$0xff]  ;;  %v159_v17 = vld [vmem:[%s1041_s22 + $0x188] sm:$0xff] }
  0x19   : > { %152 = vst [vmem:[%s1049_s23 + $0x68] sm:$0xff] %v151_v13  ;;  %154 = vst [vmem:[%s1049_s23 + $0x70] sm:$0xff] %v153_v14  ;;  %v161_v18 = vld [vmem:[%s1041_s22 + $0x1b0] sm:$0xff]  ;;  %v163_v19 = vld [vmem:[%s1041_s22 + $0x1b8] sm:$0xff] }
  0x1a   : > { %156 = vst [vmem:[%s1049_s23 + $0x78] sm:$0xff] %v155_v15  ;;  %158 = vst [vmem:[%s1049_s23 + $0x80] sm:$0xff] %v157_v16  ;;  %v165_v20 = vld [vmem:[%s1041_s22 + $0x1e0] sm:$0xff]  ;;  %v167_v21 = vld [vmem:[%s1041_s22 + $0x1e8] sm:$0xff] }
  0x1b   : > { %160 = vst [vmem:[%s1049_s23 + $0x88] sm:$0xff] %v159_v17  ;;  %162 = vst [vmem:[%s1049_s23 + $0x90] sm:$0xff] %v161_v18  ;;  %v169_v22 = vld [vmem:[%s1041_s22 + $0x210] sm:$0xff]  ;;  %v171_v23 = vld [vmem:[%s1041_s22 + $0x218] sm:$0xff] }
  0x1c   : > { %164 = vst [vmem:[%s1049_s23 + $0x98] sm:$0xff] %v163_v19  ;;  %166 = vst [vmem:[%s1049_s23 + $0xa0] sm:$0xff] %v165_v20  ;;  %v173_v24 = vld [vmem:[%s1041_s22 + $0x240] sm:$0xff]  ;;  %v175_v25 = vld [vmem:[%s1041_s22 + $0x248] sm:$0xff] }
  0x1d   : > { %168 = vst [vmem:[%s1049_s23 + $0xa8] sm:$0xff] %v167_v21  ;;  %170 = vst [vmem:[%s1049_s23 + $0xb0] sm:$0xff] %v169_v22  ;;  %v177_v26 = vld [vmem:[%s1041_s22 + $0x270] sm:$0xff]  ;;  %v179_v27 = vld [vmem:[%s1041_s22 + $0x278] sm:$0xff] }
  0x1e   : > { %172 = vst [vmem:[%s1049_s23 + $0xb8] sm:$0xff] %v171_v23  ;;  %174 = vst [vmem:[%s1049_s23 + $0xc0] sm:$0xff] %v173_v24  ;;  %v181_v28 = vld [vmem:[%s1041_s22 + $0x2a0] sm:$0xff]  ;;  %v183_v29 = vld [vmem:[%s1041_s22 + $0x2a8] sm:$0xff] }
  0x1f   : > { %176 = vst [vmem:[%s1049_s23 + $0xc8] sm:$0xff] %v175_v25  ;;  %178 = vst [vmem:[%s1049_s23 + $0xd0] sm:$0xff] %v177_v26  ;;  %v185_v30 = vld [vmem:[%s1041_s22 + $0x2d0] sm:$0xff]  ;;  %v187_v31 = vld [vmem:[%s1041_s22 + $0x2d8] sm:$0xff] }
  0x20   : > { %180 = vst [vmem:[%s1049_s23 + $0xd8] sm:$0xff] %v179_v27  ;;  %182 = vst [vmem:[%s1049_s23 + $0xe0] sm:$0xff] %v181_v28  ;;  %v189_v32 = vld [vmem:[%s1041_s22 + $0x300] sm:$0xff]  ;;  %v191_v33 = vld [vmem:[%s1041_s22 + $0x308] sm:$0xff] }
  0x21   : > { %184 = vst [vmem:[%s1049_s23 + $0xe8] sm:$0xff] %v183_v29  ;;  %186 = vst [vmem:[%s1049_s23 + $0xf0] sm:$0xff] %v185_v30  ;;  %v193_v34 = vld [vmem:[%s1041_s22 + $0x330] sm:$0xff]  ;;  %v195_v35 = vld [vmem:[%s1041_s22 + $0x338] sm:$0xff] }
  0x22   : > { %188 = vst [vmem:[%s1049_s23 + $0xf8] sm:$0xff] %v187_v31  ;;  %190 = vst [vmem:[%s1049_s23 + $0x100] sm:$0xff] %v189_v32  ;;  %v197_v36 = vld [vmem:[%s1041_s22 + $0x360] sm:$0xff]  ;;  %v199_v37 = vld [vmem:[%s1041_s22 + $0x368] sm:$0xff] }
  0x23   : > { %192 = vst [vmem:[%s1049_s23 + $0x108] sm:$0xff] %v191_v33  ;;  %194 = vst [vmem:[%s1049_s23 + $0x110] sm:$0xff] %v193_v34  ;;  %v201_v38 = vld [vmem:[%s1041_s22 + $0x390] sm:$0xff]  ;;  %v203_v39 = vld [vmem:[%s1041_s22 + $0x398] sm:$0xff] }
  0x24   : > { %196 = vst [vmem:[%s1049_s23 + $0x118] sm:$0xff] %v195_v35  ;;  %198 = vst [vmem:[%s1049_s23 + $0x120] sm:$0xff] %v197_v36  ;;  %v205_v40 = vld [vmem:[%s1041_s22 + $0x3c0] sm:$0xff]  ;;  %v207_v41 = vld [vmem:[%s1041_s22 + $0x3c8] sm:$0xff] }
  0x25   : > { %200 = vst [vmem:[%s1049_s23 + $0x128] sm:$0xff] %v199_v37  ;;  %202 = vst [vmem:[%s1049_s23 + $0x130] sm:$0xff] %v201_v38  ;;  %v209_v42 = vld [vmem:[%s1041_s22 + $0x3f0] sm:$0xff]  ;;  %v211_v43 = vld [vmem:[%s1041_s22 + $0x3f8] sm:$0xff] }
  0x26   : > { %204 = vst [vmem:[%s1049_s23 + $0x138] sm:$0xff] %v203_v39  ;;  %206 = vst [vmem:[%s1049_s23 + $0x140] sm:$0xff] %v205_v40  ;;  %v213_v44 = vld [vmem:[%s1041_s22 + $0x420] sm:$0xff]  ;;  %v215_v45 = vld [vmem:[%s1041_s22 + $0x428] sm:$0xff] }
  0x27   : > { %208 = vst [vmem:[%s1049_s23 + $0x148] sm:$0xff] %v207_v41  ;;  %210 = vst [vmem:[%s1049_s23 + $0x150] sm:$0xff] %v209_v42  ;;  %v217_v46 = vld [vmem:[%s1041_s22 + $0x450] sm:$0xff]  ;;  %v219_v47 = vld [vmem:[%s1041_s22 + $0x458] sm:$0xff] }
  0x28   : > { %212 = vst [vmem:[%s1049_s23 + $0x158] sm:$0xff] %v211_v43  ;;  %214 = vst [vmem:[%s1049_s23 + $0x160] sm:$0xff] %v213_v44  ;;  %v221_v48 = vld [vmem:[%s1041_s22 + $0x480] sm:$0xff]  ;;  %v223_v49 = vld [vmem:[%s1041_s22 + $0x488] sm:$0xff] }
  0x29   : > { %216 = vst [vmem:[%s1049_s23 + $0x168] sm:$0xff] %v215_v45  ;;  %218 = vst [vmem:[%s1049_s23 + $0x170] sm:$0xff] %v217_v46  ;;  %v225_v50 = vld [vmem:[%s1041_s22 + $0x4b0] sm:$0xff]  ;;  %v227_v51 = vld [vmem:[%s1041_s22 + $0x4b8] sm:$0xff] }
  0x2a   : > { %220 = vst [vmem:[%s1049_s23 + $0x178] sm:$0xff] %v219_v47  ;;  %222 = vst [vmem:[%s1049_s23 + $0x180] sm:$0xff] %v221_v48  ;;  %v229_v52 = vld [vmem:[%s1041_s22 + $0x4e0] sm:$0xff]  ;;  %v231_v53 = vld [vmem:[%s1041_s22 + $0x4e8] sm:$0xff] }
  0x2b   : > { %224 = vst [vmem:[%s1049_s23 + $0x188] sm:$0xff] %v223_v49  ;;  %226 = vst [vmem:[%s1049_s23 + $0x190] sm:$0xff] %v225_v50  ;;  %v233_v54 = vld [vmem:[%s1041_s22 + $0x510] sm:$0xff]  ;;  %v235_v55 = vld [vmem:[%s1041_s22 + $0x518] sm:$0xff] }
  0x2c   : > { %228 = vst [vmem:[%s1049_s23 + $0x198] sm:$0xff] %v227_v51  ;;  %230 = vst [vmem:[%s1049_s23 + $0x1a0] sm:$0xff] %v229_v52 }
  0x2d   : > { %232 = vst [vmem:[%s1049_s23 + $0x1a8] sm:$0xff] %v231_v53  ;;  %234 = vst [vmem:[%s1049_s23 + $0x1b0] sm:$0xff] %v233_v54 }
  0x2e   : > { %236 = vst [vmem:[%s1049_s23 + $0x1b8] sm:$0xff] %v235_v55 }
  0x2f PF: > { %p790_p5 = scmp.ge.s32.totalorder %s990_s11, 1  ;;  %p241_p6 = scmp.lt.s32.totalorder %s990_s11, 4 }
  0x31   : > { %p242_p7 = pnand %p790_p5, %p241_p6 }
  0x32   : > { %s248_s24 = sand.u32 (!%p242_p7), 1, %s982_s9   ;;  %v1163_v56 = vld [vmem:[%s1242_s0] sm:$0xff] (!%p242_p7)  ;;  %vm620_vm0 = vcmask (!%p242_p7), 785408   ;;  %s791_s29 = sshll.u32 (!%p242_p7), %s784_s12, 2 }
  0x33   : > { %245 = sbr.rel (%p242_p7) target bundleno = 331 (0x14b), region = 47  ;;  %v794_v57 = vcombine.high (!%p242_p7), %v1163_v56, %v1163_v56  ;;  %v793_v50 = vcombine.low (!%p242_p7), %v1163_v56, %v1163_v56  ;;  %p271_p8 = scmp.lt.s32.totalorder (!%p242_p7), %s791_s29, 11 }
  0x34   : > { %s857_s27 = smul.u32 (!%p242_p7), 448, %s248_s24 }
  0x35   : > { %851 = vmatprep.mubr.msk.bf16.mxu0 (!%p242_p7), %vm620_vm0, %v794_v57  ;;  %852 = vmatprep.mubr.msk.bf16.mxu1 (!%p242_p7), %vm620_vm0, %v794_v57 }
  0x36   : > { %s1167_s28 = scalar_lea.vmem (!%p242_p7), [#allocation2], %s857_s27 }
  0x37   : > { %v882_v58 = vld [vmem:[%s1167_s28 + $0x4] ss:$16 sps:$4 sm:$0xff] (!%p242_p7)   ;;  %v884_v59 = vld [vmem:[%s1167_s28 + $0xc] ss:$16 sps:$4 sm:$0xff] (!%p242_p7)   ;;  %v886_v60 = vld [vmem:[%s1167_s28] ss:$16 sps:$4 sm:$0xff] (!%p242_p7)  }
  0x38   : > { %624 = vmatprep.subr.bf16.mxu0 (!%p242_p7), %v882_v58  ;;  %v887_v61 = vld [vmem:[%s1167_s28 + $0x8] ss:$16 sps:$4 sm:$0xff] (!%p242_p7)   ;;  %665 = vmatprep.subr.bf16.mxu1 (!%p242_p7), %v884_v59  ;;  %v888_v62 = vld [vmem:[%s1167_s28 + $0x24] ss:$16 sps:$4 sm:$0xff] (!%p242_p7)   ;;  %v890_v63 = vld [vmem:[%s1167_s28 + $0x2c] ss:$16 sps:$4 sm:$0xff] (!%p242_p7)  }
  0x39   : > { %625 = vmatpush1.bf16.msra.mxu0 (!%p242_p7), %v886_v60  ;;  %666 = vmatpush1.bf16.msra.mxu1 (!%p242_p7), %v887_v61  ;;  %v892_v0 = vld [vmem:[%s1167_s28 + $0x20] ss:$16 sps:$4 sm:$0xff] (!%p242_p7)   ;;  %v893_v1 = vld [vmem:[%s1167_s28 + $0x28] ss:$16 sps:$4 sm:$0xff] (!%p242_p7)   ;;  %v894_v2 = vld [vmem:[%s1167_s28 + $0x44] ss:$16 sps:$4 sm:$0xff] (!%p242_p7)  }
  0x3a   : > { %626 = vmatprep.subr.bf16.mxu0 %v888_v62  ;;  %667 = vmatprep.subr.bf16.mxu1 %v890_v63  ;;  %v896_v3 = vld [vmem:[%s1167_s28 + $0x4c] ss:$16 sps:$4 sm:$0xff]   ;;  %v898_v4 = vld [vmem:[%s1167_s28 + $0x40] ss:$16 sps:$4 sm:$0xff]   ;;  %v899_v5 = vld [vmem:[%s1167_s28 + $0x48] ss:$16 sps:$4 sm:$0xff]  }
  0x3b   : > { %v900_v6 = vld [vmem:[%s1167_s28 + $0x64] ss:$16 sps:$4 sm:$0xff]   ;;  %v902_v7 = vld [vmem:[%s1167_s28 + $0x6c] ss:$16 sps:$4 sm:$0xff]   ;;  %v904_v8 = vld [vmem:[%s1167_s28 + $0x60] ss:$16 sps:$4 sm:$0xff]  }
  0x3c   : > { %v905_v9 = vld [vmem:[%s1167_s28 + $0x68] ss:$16 sps:$4 sm:$0xff]   ;;  %v906_v10 = vld [vmem:[%s1167_s28 + $0x84] ss:$16 sps:$4 sm:$0xff]   ;;  %v908_v11 = vld [vmem:[%s1167_s28 + $0x8c] ss:$16 sps:$4 sm:$0xff]  }
  0x3d   : > { %627 = vmatpush1.bf16.msra.mxu0 %v892_v0  ;;  %668 = vmatpush1.bf16.msra.mxu1 %v893_v1  ;;  %v910_v12 = vld [vmem:[%s1167_s28 + $0x80] ss:$16 sps:$4 sm:$0xff]   ;;  %v911_v13 = vld [vmem:[%s1167_s28 + $0x88] ss:$16 sps:$4 sm:$0xff]   ;;  %v912_v14 = vld [vmem:[%s1167_s28 + $0xa4] ss:$16 sps:$4 sm:$0xff]  }
  0x3e   : > { %628 = vmatprep.subr.bf16.mxu0 %v894_v2  ;;  %669 = vmatprep.subr.bf16.mxu1 %v896_v3  ;;  %v914_v15 = vld [vmem:[%s1167_s28 + $0xac] ss:$16 sps:$4 sm:$0xff]   ;;  %v916_v16 = vld [vmem:[%s1167_s28 + $0xa0] ss:$16 sps:$4 sm:$0xff]   ;;  %v917_v17 = vld [vmem:[%s1167_s28 + $0xa8] ss:$16 sps:$4 sm:$0xff]  }
  0x3f   : > { %v918_v18 = vld [vmem:[%s1167_s28 + $0xc4] ss:$16 sps:$4 sm:$0xff]   ;;  %v920_v19 = vld [vmem:[%s1167_s28 + $0xcc] ss:$16 sps:$4 sm:$0xff]   ;;  %v922_v20 = vld [vmem:[%s1167_s28 + $0xc0] ss:$16 sps:$4 sm:$0xff]  }
  0x40   : > { %v923_v21 = vld [vmem:[%s1167_s28 + $0xc8] ss:$16 sps:$4 sm:$0xff]   ;;  %v924_v22 = vld [vmem:[%s1167_s28 + $0xe4] ss:$16 sps:$4 sm:$0xff]   ;;  %v926_v23 = vld [vmem:[%s1167_s28 + $0xec] ss:$16 sps:$4 sm:$0xff]  }
  0x41   : > { %629 = vmatpush1.bf16.msra.mxu0 %v898_v4  ;;  %670 = vmatpush1.bf16.msra.mxu1 %v899_v5  ;;  %v928_v24 = vld [vmem:[%s1167_s28 + $0xe0] ss:$16 sps:$4 sm:$0xff]   ;;  %v929_v25 = vld [vmem:[%s1167_s28 + $0xe8] ss:$16 sps:$4 sm:$0xff]   ;;  %v930_v26 = vld [vmem:[%s1167_s28 + $0x104] ss:$16 sps:$4 sm:$0xff]  }
  0x42   : > { %630 = vmatprep.subr.bf16.mxu0 %v900_v6  ;;  %671 = vmatprep.subr.bf16.mxu1 %v902_v7  ;;  %v932_v27 = vld [vmem:[%s1167_s28 + $0x10c] ss:$16 sps:$4 sm:$0xff]   ;;  %v934_v28 = vld [vmem:[%s1167_s28 + $0x100] ss:$16 sps:$4 sm:$0xff]   ;;  %v935_v29 = vld [vmem:[%s1167_s28 + $0x108] ss:$16 sps:$4 sm:$0xff]  }
  0x43   : > { %v936_v30 = vld [vmem:[%s1167_s28 + $0x124] ss:$16 sps:$4 sm:$0xff]   ;;  %v938_v31 = vld [vmem:[%s1167_s28 + $0x12c] ss:$16 sps:$4 sm:$0xff]   ;;  %v940_v32 = vld [vmem:[%s1167_s28 + $0x120] ss:$16 sps:$4 sm:$0xff]  }
  0x44   : > { %v941_v33 = vld [vmem:[%s1167_s28 + $0x128] ss:$16 sps:$4 sm:$0xff]   ;;  %v942_v34 = vld [vmem:[%s1167_s28 + $0x144] ss:$16 sps:$4 sm:$0xff]   ;;  %v944_v35 = vld [vmem:[%s1167_s28 + $0x14c] ss:$16 sps:$4 sm:$0xff]  }
  0x45   : > { %631 = vmatpush1.bf16.msra.mxu0 %v904_v8  ;;  %672 = vmatpush1.bf16.msra.mxu1 %v905_v9  ;;  %v946_v36 = vld [vmem:[%s1167_s28 + $0x140] ss:$16 sps:$4 sm:$0xff]   ;;  %v947_v37 = vld [vmem:[%s1167_s28 + $0x148] ss:$16 sps:$4 sm:$0xff]   ;;  %v948_v38 = vld [vmem:[%s1167_s28 + $0x164] ss:$16 sps:$4 sm:$0xff]  }
  0x46   : > { %632 = vmatprep.subr.bf16.mxu0 %v906_v10  ;;  %673 = vmatprep.subr.bf16.mxu1 %v908_v11  ;;  %v950_v39 = vld [vmem:[%s1167_s28 + $0x16c] ss:$16 sps:$4 sm:$0xff]   ;;  %v952_v40 = vld [vmem:[%s1167_s28 + $0x160] ss:$16 sps:$4 sm:$0xff]   ;;  %v953_v41 = vld [vmem:[%s1167_s28 + $0x168] ss:$16 sps:$4 sm:$0xff]  }
  0x47   : > { %v954_v42 = vld [vmem:[%s1167_s28 + $0x184] ss:$16 sps:$4 sm:$0xff]   ;;  %v956_v43 = vld [vmem:[%s1167_s28 + $0x18c] ss:$16 sps:$4 sm:$0xff]   ;;  %v958_v44 = vld [vmem:[%s1167_s28 + $0x180] ss:$16 sps:$4 sm:$0xff]  }
  0x48   : > { %v959_v45 = vld [vmem:[%s1167_s28 + $0x188] ss:$16 sps:$4 sm:$0xff]   ;;  %v960_v46 = vld [vmem:[%s1167_s28 + $0x1a4] ss:$16 sps:$4 sm:$0xff]   ;;  %v962_v47 = vld [vmem:[%s1167_s28 + $0x1ac] ss:$16 sps:$4 sm:$0xff]  }
  0x49   : > { %633 = vmatpush1.bf16.msra.mxu0 %v910_v12  ;;  %674 = vmatpush1.bf16.msra.mxu1 %v911_v13  ;;  %v964_v48 = vld [vmem:[%s1167_s28 + $0x1a0] ss:$16 sps:$4 sm:$0xff]   ;;  %v965_v49 = vld [vmem:[%s1167_s28 + $0x1a8] ss:$16 sps:$4 sm:$0xff]   ;;  %s1249_s29 = smov (!%p271_p8, %s791_s29), 11 }
  0x4a   : > { %634 = vmatprep.subr.bf16.mxu0 %v912_v14  ;;  %675 = vmatprep.subr.bf16.mxu1 %v914_v15  ;;  %s792_s30 = sshll.u32 %s1249_s29, 3 }
  0x4b   : > { %s274_s5 = scalar_lea.vmem %s1244_s2, %s792_s30 }
  0x4d   : > { %635 = vmatpush1.bf16.msra.mxu0 %v916_v16  ;;  %676 = vmatpush1.bf16.msra.mxu1 %v917_v17 }
  0x4e   : > { %636 = vmatprep.subr.bf16.mxu0 %v918_v18  ;;  %677 = vmatprep.subr.bf16.mxu1 %v920_v19 }
  0x51   : > { %637 = vmatpush1.bf16.msra.mxu0 %v922_v20  ;;  %678 = vmatpush1.bf16.msra.mxu1 %v923_v21 }
  0x52   : > { %638 = vmatprep.subr.bf16.mxu0 %v924_v22  ;;  %679 = vmatprep.subr.bf16.mxu1 %v926_v23 }
  0x55   : > { %639 = vmatpush1.bf16.msra.mxu0 %v928_v24  ;;  %680 = vmatpush1.bf16.msra.mxu1 %v929_v25 }
  0x56   : > { %640 = vmatprep.subr.bf16.mxu0 %v930_v26  ;;  %681 = vmatprep.subr.bf16.mxu1 %v932_v27 }
  0x59   : > { %641 = vmatpush1.bf16.msra.mxu0 %v934_v28  ;;  %682 = vmatpush1.bf16.msra.mxu1 %v935_v29 }
  0x5a   : > { %642 = vmatprep.subr.bf16.mxu0 %v936_v30  ;;  %683 = vmatprep.subr.bf16.mxu1 %v938_v31 }
  0x5d   : > { %643 = vmatpush1.bf16.msra.mxu0 %v940_v32  ;;  %684 = vmatpush1.bf16.msra.mxu1 %v941_v33 }
  0x5e   : > { %644 = vmatprep.subr.bf16.mxu0 %v942_v34  ;;  %685 = vmatprep.subr.bf16.mxu1 %v944_v35 }
  0x61   : > { %645 = vmatpush1.bf16.msra.mxu0 %v946_v36  ;;  %686 = vmatpush1.bf16.msra.mxu1 %v947_v37 }
  0x62   : > { %646 = vmatprep.subr.bf16.mxu0 %v948_v38  ;;  %687 = vmatprep.subr.bf16.mxu1 %v950_v39 }
  0x65   : > { %647 = vmatpush1.bf16.msra.mxu0 %v952_v40  ;;  %688 = vmatpush1.bf16.msra.mxu1 %v953_v41 }
  0x66   : > { %648 = vmatprep.subr.bf16.mxu0 %v954_v42  ;;  %689 = vmatprep.subr.bf16.mxu1 %v956_v43 }
  0x69   : > { %649 = vmatpush1.bf16.msra.mxu0 %v958_v44  ;;  %690 = vmatpush1.bf16.msra.mxu1 %v959_v45 }
  0x6a   : > { %650 = vmatprep.subr.bf16.mxu0 %v960_v46  ;;  %691 = vmatprep.subr.bf16.mxu1 %v962_v47 }
  0x6d   : > { %651 = vmatpush1.bf16.msra.mxu0 %v964_v48  ;;  %692 = vmatpush1.bf16.msra.mxu1 %v965_v49 }
  0x70   : > { %657 = vmatmul.mubr.bf16.vlgmr.msra.gmra.mrb[0].mxu0 %v793_v50  ;;  %698 = vmatmul.mubr.bf16.vlgmr.msra.gmra.mrb[0].mxu1 %v793_v50 }
 0x143   : > { %v658_v51 = vpop.f32.mrb[0].mxu0  ;;  %v699_v52 = vpop.f32.mrb[0].mxu1 }
 0x144   : > { %vm706_vm1 = vcmp.ge.f32.partialorder %v658_v51, 0.0  ;;  %v710_v53 = vmul.f32 0.1, %v658_v51  ;;  %vm708_vm2 = vcmp.ge.f32.partialorder %v699_v52, 0.0  ;;  %v712_v54 = vmul.f32 0.1, %v699_v52 }
 0x145   : > { %v660_v55 = vpop.f32.mrb[1].mxu0  ;;  %v701_v56 = vpop.f32.mrb[1].mxu1 }
 0x146   : > { %v714_v57 = vsel %vm706_vm1, %v658_v51, %v710_v53  ;;  %v716_v58 = vsel %vm708_vm2, %v699_v52, %v712_v54  ;;  %vm707_vm3 = vcmp.ge.f32.partialorder %v660_v55, 0.0  ;;  %v711_v59 = vmul.f32 0.1, %v660_v55  ;;  %v662_v60 = vpop.f32.mrb[2].mxu0  ;;  %v703_v61 = vpop.f32.mrb[2].mxu1 }
 0x147   : > { %718 = vst [vmem:[%s274_s5] sm:$0xff] %v714_v57  ;;  %720 = vst [vmem:[%s274_s5 + $0x10] sm:$0xff] %v716_v58  ;;  %vm709_vm4 = vcmp.ge.f32.partialorder %v701_v56, 0.0  ;;  %v713_v62 = vmul.f32 0.1, %v701_v56  ;;  %v663_v63 = vpop.f32.mrb[3].mxu0  ;;  %v704_v0 = vpop.f32.mrb[3].mxu1 }
 0x148   : > { %v715_v1 = vsel %vm707_vm3, %v660_v55, %v711_v59 }
 0x149   : > { %719 = vst [vmem:[%s274_s5 + $0x8] sm:$0xff] %v715_v1  ;;  %v717_v2 = vsel %vm709_vm4, %v701_v56, %v713_v62 }
 0x14a   : > { %721 = vst [vmem:[%s274_s5 + $0x18] sm:$0xff] %v717_v2 }
 0x14b PF: > { %p9_p9 = scmp.ge.s32.totalorder %s1024_s13, 5   ;;  %s1245_s9 = smov %s986_s10 }
 0x14c   : > { %s1246_s10 = smov %s1033_s16  ;;  %s1247_s11 = smov %s1024_s13 }
 0x14d   :  { %11 = sbr.rel (!%p9_p9) target bundleno = 2 (0x2), region = 86 }

// kernel: forward.38
= control target key start
LH: loop header
LB: loop body
LE: loop exit
PB: predicated region body
PF: predicated region fallthrough
CT: control target
= control target key end

     0   :  { %s1007_s9 = smov 0   ;;  %s1009_s10 = smov 0   ;;  %s1242_s0 = inlined_call_operand.vmem [shape: bf16[8,224], index: 0, kind: input, shape index: {}]   ;;  %s1243_s1 = inlined_call_operand.vmem [shape: bf16[224,1024], index: 1, kind: input, shape index: {}]   ;;  %s1244_s2 = inlined_call_operand.vmem [shape: f32[8,1024], index: 2, kind: output, shape index: {}]  }
   0x1   :  { %s1011_s11 = smov 0  }
   0x2 LB: > { %s784_s12 = sadd.s32 4294967295, %s990_s11   ;;  %s1024_s13 = sadd.s32 1, %s990_s11   ;;  %s990_s11 = sphi %s1011_s11, %s1247_s11   ;;  %s986_s10 = sphi %s1009_s10, %s1246_s10   ;;  %s982_s9 = sphi %s1007_s9, %s1245_s9  }
   0x3   : > { %s37_s14 = ssub.s32 %s990_s11, %s1024_s13  ;;  %s40_s15 = sadd.s32 1, %s986_s10 }
   0x4   : > { %p38_p0 = scmp.eq.s32.totalorder %s37_s14, 0  ;;  %p47_p1 = scmp.ne.s32.totalorder %s986_s10, %s982_s9 }
   0x5   : > { %p48_p2 = scmp.eq.s32.totalorder %s990_s11, 0  ;;  %p787_p4 = scmp.ge.s32.totalorder %s990_s11, 2 }
   0x6   : > { %s1033_s16 = scalar_select %p38_p0, %s986_s10, %s40_s15  }
   0x7   : > { %p49_p3 = por %p48_p2, %p47_p1  ;;  %102 = sbr.rel (%p787_p4) target bundleno = 46 (0x2e), region = 20 }
   0xe   : > { %105 = sbr.rel (!%p49_p3) target bundleno = 46 (0x2e), region = 24  ;;  %s107_s17 = sand.u32 (%p49_p3), 1, %s986_s10  }
   0xf   : > { %s855_s18 = sshll.u32 (%p49_p3), %s990_s11, 4  ;;  %s856_s19 = smul.u32 (%p49_p3), 448, %s107_s17 }
  0x10   : > { %s1041_s22 = scalar_lea.vmem (%p49_p3), %s1243_s1, %s855_s18 }
  0x11   : > { %v125_v0 = vld [vmem:[%s1041_s22] sm:$0xff] (%p49_p3)  ;;  %v127_v1 = vld [vmem:[%s1041_s22 + $0x8] sm:$0xff] (%p49_p3)  ;;  %s1049_s23 = scalar_lea.vmem (%p49_p3), [#allocation2], %s856_s19 }
  0x12   : > { %v129_v2 = vld [vmem:[%s1041_s22 + $0x20] sm:$0xff] (%p49_p3)  ;;  %v131_v3 = vld [vmem:[%s1041_s22 + $0x28] sm:$0xff] (%p49_p3)  ;;  %126 = vst [vmem:[%s1049_s23] sm:$0xff] (%p49_p3), %v125_v0  ;;  %128 = vst [vmem:[%s1049_s23 + $0x8] sm:$0xff] (%p49_p3), %v127_v1 }
  0x13   : > { %v133_v4 = vld [vmem:[%s1041_s22 + $0x40] sm:$0xff] (%p49_p3)  ;;  %v135_v5 = vld [vmem:[%s1041_s22 + $0x48] sm:$0xff] (%p49_p3)  ;;  %130 = vst [vmem:[%s1049_s23 + $0x10] sm:$0xff] (%p49_p3), %v129_v2  ;;  %132 = vst [vmem:[%s1049_s23 + $0x18] sm:$0xff] (%p49_p3), %v131_v3 }
  0x14   : > { %134 = vst [vmem:[%s1049_s23 + $0x20] sm:$0xff] (%p49_p3), %v133_v4  ;;  %136 = vst [vmem:[%s1049_s23 + $0x28] sm:$0xff] (%p49_p3), %v135_v5  ;;  %v137_v6 = vld [vmem:[%s1041_s22 + $0x60] sm:$0xff] (%p49_p3)  ;;  %v139_v7 = vld [vmem:[%s1041_s22 + $0x68] sm:$0xff] (%p49_p3) }
  0x15   : > { %v141_v8 = vld [vmem:[%s1041_s22 + $0x80] sm:$0xff]  ;;  %138 = vst [vmem:[%s1049_s23 + $0x30] sm:$0xff] %v137_v6  ;;  %140 = vst [vmem:[%s1049_s23 + $0x38] sm:$0xff] %v139_v7  ;;  %v143_v9 = vld [vmem:[%s1041_s22 + $0x88] sm:$0xff] }
  0x16   : > { %142 = vst [vmem:[%s1049_s23 + $0x40] sm:$0xff] %v141_v8  ;;  %v145_v10 = vld [vmem:[%s1041_s22 + $0xa0] sm:$0xff]  ;;  %v147_v11 = vld [vmem:[%s1041_s22 + $0xa8] sm:$0xff]  ;;  %144 = vst [vmem:[%s1049_s23 + $0x48] sm:$0xff] %v143_v9 }
  0x17   : > { %146 = vst [vmem:[%s1049_s23 + $0x50] sm:$0xff] %v145_v10  ;;  %148 = vst [vmem:[%s1049_s23 + $0x58] sm:$0xff] %v147_v11  ;;  %v149_v12 = vld [vmem:[%s1041_s22 + $0xc0] sm:$0xff]  ;;  %v151_v13 = vld [vmem:[%s1041_s22 + $0xc8] sm:$0xff] }
  0x18   : > { %v153_v14 = vld [vmem:[%s1041_s22 + $0xe0] sm:$0xff]  ;;  %150 = vst [vmem:[%s1049_s23 + $0x60] sm:$0xff] %v149_v12  ;;  %152 = vst [vmem:[%s1049_s23 + $0x68] sm:$0xff] %v151_v13  ;;  %v155_v15 = vld [vmem:[%s1041_s22 + $0xe8] sm:$0xff] }
  0x19   : > { %154 = vst [vmem:[%s1049_s23 + $0x70] sm:$0xff] %v153_v14  ;;  %v157_v16 = vld [vmem:[%s1041_s22 + $0x100] sm:$0xff]  ;;  %v159_v17 = vld [vmem:[%s1041_s22 + $0x108] sm:$0xff]  ;;  %156 = vst [vmem:[%s1049_s23 + $0x78] sm:$0xff] %v155_v15 }
  0x1a   : > { %158 = vst [vmem:[%s1049_s23 + $0x80] sm:$0xff] %v157_v16  ;;  %160 = vst [vmem:[%s1049_s23 + $0x88] sm:$0xff] %v159_v17  ;;  %v161_v18 = vld [vmem:[%s1041_s22 + $0x120] sm:$0xff]  ;;  %v163_v19 = vld [vmem:[%s1041_s22 + $0x128] sm:$0xff] }
  0x1b   : > { %v165_v20 = vld [vmem:[%s1041_s22 + $0x140] sm:$0xff]  ;;  %162 = vst [vmem:[%s1049_s23 + $0x90] sm:$0xff] %v161_v18  ;;  %164 = vst [vmem:[%s1049_s23 + $0x98] sm:$0xff] %v163_v19  ;;  %v167_v21 = vld [vmem:[%s1041_s22 + $0x148] sm:$0xff] }
  0x1c   : > { %166 = vst [vmem:[%s1049_s23 + $0xa0] sm:$0xff] %v165_v20  ;;  %v169_v22 = vld [vmem:[%s1041_s22 + $0x160] sm:$0xff]  ;;  %v171_v23 = vld [vmem:[%s1041_s22 + $0x168] sm:$0xff]  ;;  %168 = vst [vmem:[%s1049_s23 + $0xa8] sm:$0xff] %v167_v21 }
  0x1d   : > { %170 = vst [vmem:[%s1049_s23 + $0xb0] sm:$0xff] %v169_v22  ;;  %172 = vst [vmem:[%s1049_s23 + $0xb8] sm:$0xff] %v171_v23  ;;  %v173_v24 = vld [vmem:[%s1041_s22 + $0x180] sm:$0xff]  ;;  %v175_v25 = vld [vmem:[%s1041_s22 + $0x188] sm:$0xff] }
  0x1e   : > { %v177_v26 = vld [vmem:[%s1041_s22 + $0x1a0] sm:$0xff]  ;;  %174 = vst [vmem:[%s1049_s23 + $0xc0] sm:$0xff] %v173_v24  ;;  %176 = vst [vmem:[%s1049_s23 + $0xc8] sm:$0xff] %v175_v25  ;;  %v179_v27 = vld [vmem:[%s1041_s22 + $0x1a8] sm:$0xff] }
  0x1f   : > { %178 = vst [vmem:[%s1049_s23 + $0xd0] sm:$0xff] %v177_v26  ;;  %v181_v28 = vld [vmem:[%s1041_s22 + $0x1c0] sm:$0xff]  ;;  %v183_v29 = vld [vmem:[%s1041_s22 + $0x1c8] sm:$0xff]  ;;  %180 = vst [vmem:[%s1049_s23 + $0xd8] sm:$0xff] %v179_v27 }
  0x20   : > { %182 = vst [vmem:[%s1049_s23 + $0xe0] sm:$0xff] %v181_v28  ;;  %184 = vst [vmem:[%s1049_s23 + $0xe8] sm:$0xff] %v183_v29  ;;  %v185_v30 = vld [vmem:[%s1041_s22 + $0x1e0] sm:$0xff]  ;;  %v187_v31 = vld [vmem:[%s1041_s22 + $0x1e8] sm:$0xff] }
  0x21   : > { %v189_v32 = vld [vmem:[%s1041_s22 + $0x200] sm:$0xff]  ;;  %186 = vst [vmem:[%s1049_s23 + $0xf0] sm:$0xff] %v185_v30  ;;  %188 = vst [vmem:[%s1049_s23 + $0xf8] sm:$0xff] %v187_v31  ;;  %v191_v33 = vld [vmem:[%s1041_s22 + $0x208] sm:$0xff] }
  0x22   : > { %190 = vst [vmem:[%s1049_s23 + $0x100] sm:$0xff] %v189_v32  ;;  %v193_v34 = vld [vmem:[%s1041_s22 + $0x220] sm:$0xff]  ;;  %v195_v35 = vld [vmem:[%s1041_s22 + $0x228] sm:$0xff]  ;;  %192 = vst [vmem:[%s1049_s23 + $0x108] sm:$0xff] %v191_v33 }
  0x23   : > { %194 = vst [vmem:[%s1049_s23 + $0x110] sm:$0xff] %v193_v34  ;;  %196 = vst [vmem:[%s1049_s23 + $0x118] sm:$0xff] %v195_v35  ;;  %v197_v36 = vld [vmem:[%s1041_s22 + $0x240] sm:$0xff]  ;;  %v199_v37 = vld [vmem:[%s1041_s22 + $0x248] sm:$0xff] }
  0x24   : > { %v201_v38 = vld [vmem:[%s1041_s22 + $0x260] sm:$0xff]  ;;  %198 = vst [vmem:[%s1049_s23 + $0x120] sm:$0xff] %v197_v36  ;;  %200 = vst [vmem:[%s1049_s23 + $0x128] sm:$0xff] %v199_v37  ;;  %v203_v39 = vld [vmem:[%s1041_s22 + $0x268] sm:$0xff] }
  0x25   : > { %202 = vst [vmem:[%s1049_s23 + $0x130] sm:$0xff] %v201_v38  ;;  %v205_v40 = vld [vmem:[%s1041_s22 + $0x280] sm:$0xff]  ;;  %v207_v41 = vld [vmem:[%s1041_s22 + $0x288] sm:$0xff]  ;;  %204 = vst [vmem:[%s1049_s23 + $0x138] sm:$0xff] %v203_v39 }
  0x26   : > { %206 = vst [vmem:[%s1049_s23 + $0x140] sm:$0xff] %v205_v40  ;;  %208 = vst [vmem:[%s1049_s23 + $0x148] sm:$0xff] %v207_v41  ;;  %v209_v42 = vld [vmem:[%s1041_s22 + $0x2a0] sm:$0xff]  ;;  %v211_v43 = vld [vmem:[%s1041_s22 + $0x2a8] sm:$0xff] }
  0x27   : > { %v213_v44 = vld [vmem:[%s1041_s22 + $0x2c0] sm:$0xff]  ;;  %210 = vst [vmem:[%s1049_s23 + $0x150] sm:$0xff] %v209_v42  ;;  %212 = vst [vmem:[%s1049_s23 + $0x158] sm:$0xff] %v211_v43  ;;  %v215_v45 = vld [vmem:[%s1041_s22 + $0x2c8] sm:$0xff] }
  0x28   : > { %214 = vst [vmem:[%s1049_s23 + $0x160] sm:$0xff] %v213_v44  ;;  %v217_v46 = vld [vmem:[%s1041_s22 + $0x2e0] sm:$0xff]  ;;  %v219_v47 = vld [vmem:[%s1041_s22 + $0x2e8] sm:$0xff]  ;;  %216 = vst [vmem:[%s1049_s23 + $0x168] sm:$0xff] %v215_v45 }
  0x29   : > { %218 = vst [vmem:[%s1049_s23 + $0x170] sm:$0xff] %v217_v46  ;;  %220 = vst [vmem:[%s1049_s23 + $0x178] sm:$0xff] %v219_v47  ;;  %v221_v48 = vld [vmem:[%s1041_s22 + $0x300] sm:$0xff]  ;;  %v223_v49 = vld [vmem:[%s1041_s22 + $0x308] sm:$0xff] }
  0x2a   : > { %v225_v50 = vld [vmem:[%s1041_s22 + $0x320] sm:$0xff]  ;;  %222 = vst [vmem:[%s1049_s23 + $0x180] sm:$0xff] %v221_v48  ;;  %224 = vst [vmem:[%s1049_s23 + $0x188] sm:$0xff] %v223_v49  ;;  %v227_v51 = vld [vmem:[%s1041_s22 + $0x328] sm:$0xff] }
  0x2b   : > { %226 = vst [vmem:[%s1049_s23 + $0x190] sm:$0xff] %v225_v50  ;;  %v229_v52 = vld [vmem:[%s1041_s22 + $0x340] sm:$0xff]  ;;  %v231_v53 = vld [vmem:[%s1041_s22 + $0x348] sm:$0xff]  ;;  %228 = vst [vmem:[%s1049_s23 + $0x198] sm:$0xff] %v227_v51 }
  0x2c   : > { %230 = vst [vmem:[%s1049_s23 + $0x1a0] sm:$0xff] %v229_v52  ;;  %232 = vst [vmem:[%s1049_s23 + $0x1a8] sm:$0xff] %v231_v53  ;;  %v233_v54 = vld [vmem:[%s1041_s22 + $0x360] sm:$0xff]  ;;  %v235_v55 = vld [vmem:[%s1041_s22 + $0x368] sm:$0xff] }
  0x2d   : > { %234 = vst [vmem:[%s1049_s23 + $0x1b0] sm:$0xff] %v233_v54  ;;  %236 = vst [vmem:[%s1049_s23 + $0x1b8] sm:$0xff] %v235_v55 }
  0x2e PF: > { %p790_p5 = scmp.ge.s32.totalorder %s990_s11, 1  ;;  %p241_p6 = scmp.lt.s32.totalorder %s990_s11, 3 }
  0x30   : > { %p242_p7 = pnand %p790_p5, %p241_p6 }
  0x31   : > { %s248_s24 = sand.u32 (!%p242_p7), 1, %s982_s9   ;;  %v1163_v56 = vld [vmem:[%s1242_s0] sm:$0xff] (!%p242_p7)  ;;  %vm620_vm0 = vcmask (!%p242_p7), 785408   ;;  %s791_s29 = sshll.u32 (!%p242_p7), %s784_s12, 2 }
  0x32   : > { %245 = sbr.rel (%p242_p7) target bundleno = 329 (0x149), region = 47  ;;  %v794_v57 = vcombine.high (!%p242_p7), %v1163_v56, %v1163_v56  ;;  %v793_v50 = vcombine.low (!%p242_p7), %v1163_v56, %v1163_v56  ;;  %p271_p8 = scmp.lt.s32.totalorder (!%p242_p7), %s791_s29, 7 }
  0x33   : > { %s857_s27 = smul.u32 (!%p242_p7), 448, %s248_s24 }
  0x34   : > { %851 = vmatprep.mubr.msk.bf16.mxu0 (!%p242_p7), %vm620_vm0, %v794_v57  ;;  %852 = vmatprep.mubr.msk.bf16.mxu1 (!%p242_p7), %vm620_vm0, %v794_v57 }
  0x35   : > { %s1167_s28 = scalar_lea.vmem (!%p242_p7), [#allocation2], %s857_s27 }
  0x36   : > { %v882_v58 = vld [vmem:[%s1167_s28 + $0x4] ss:$16 sps:$4 sm:$0xff] (!%p242_p7)   ;;  %v884_v59 = vld [vmem:[%s1167_s28 + $0xc] ss:$16 sps:$4 sm:$0xff] (!%p242_p7)   ;;  %v886_v60 = vld [vmem:[%s1167_s28] ss:$16 sps:$4 sm:$0xff] (!%p242_p7)  }
  0x37   : > { %624 = vmatprep.subr.bf16.mxu0 (!%p242_p7), %v882_v58  ;;  %v887_v61 = vld [vmem:[%s1167_s28 + $0x8] ss:$16 sps:$4 sm:$0xff] (!%p242_p7)   ;;  %665 = vmatprep.subr.bf16.mxu1 (!%p242_p7), %v884_v59  ;;  %v888_v62 = vld [vmem:[%s1167_s28 + $0x24] ss:$16 sps:$4 sm:$0xff] (!%p242_p7)   ;;  %v890_v63 = vld [vmem:[%s1167_s28 + $0x2c] ss:$16 sps:$4 sm:$0xff] (!%p242_p7)  }
  0x38   : > { %625 = vmatpush1.bf16.msra.mxu0 (!%p242_p7), %v886_v60  ;;  %666 = vmatpush1.bf16.msra.mxu1 (!%p242_p7), %v887_v61  ;;  %v892_v0 = vld [vmem:[%s1167_s28 + $0x20] ss:$16 sps:$4 sm:$0xff] (!%p242_p7)   ;;  %v893_v1 = vld [vmem:[%s1167_s28 + $0x28] ss:$16 sps:$4 sm:$0xff] (!%p242_p7)   ;;  %v894_v2 = vld [vmem:[%s1167_s28 + $0x44] ss:$16 sps:$4 sm:$0xff] (!%p242_p7)  }
  0x39   : > { %626 = vmatprep.subr.bf16.mxu0 %v888_v62  ;;  %667 = vmatprep.subr.bf16.mxu1 %v890_v63  ;;  %v896_v3 = vld [vmem:[%s1167_s28 + $0x4c] ss:$16 sps:$4 sm:$0xff]   ;;  %v898_v4 = vld [vmem:[%s1167_s28 + $0x40] ss:$16 sps:$4 sm:$0xff]   ;;  %v899_v5 = vld [vmem:[%s1167_s28 + $0x48] ss:$16 sps:$4 sm:$0xff]  }
  0x3a   : > { %v900_v6 = vld [vmem:[%s1167_s28 + $0x64] ss:$16 sps:$4 sm:$0xff]   ;;  %v902_v7 = vld [vmem:[%s1167_s28 + $0x6c] ss:$16 sps:$4 sm:$0xff]   ;;  %v904_v8 = vld [vmem:[%s1167_s28 + $0x60] ss:$16 sps:$4 sm:$0xff]  }
  0x3b   : > { %v905_v9 = vld [vmem:[%s1167_s28 + $0x68] ss:$16 sps:$4 sm:$0xff]   ;;  %v906_v10 = vld [vmem:[%s1167_s28 + $0x84] ss:$16 sps:$4 sm:$0xff]   ;;  %v908_v11 = vld [vmem:[%s1167_s28 + $0x8c] ss:$16 sps:$4 sm:$0xff]  }
  0x3c   : > { %627 = vmatpush1.bf16.msra.mxu0 %v892_v0  ;;  %668 = vmatpush1.bf16.msra.mxu1 %v893_v1  ;;  %v910_v12 = vld [vmem:[%s1167_s28 + $0x80] ss:$16 sps:$4 sm:$0xff]   ;;  %v911_v13 = vld [vmem:[%s1167_s28 + $0x88] ss:$16 sps:$4 sm:$0xff]   ;;  %v912_v14 = vld [vmem:[%s1167_s28 + $0xa4] ss:$16 sps:$4 sm:$0xff]  }
  0x3d   : > { %628 = vmatprep.subr.bf16.mxu0 %v894_v2  ;;  %669 = vmatprep.subr.bf16.mxu1 %v896_v3  ;;  %v914_v15 = vld [vmem:[%s1167_s28 + $0xac] ss:$16 sps:$4 sm:$0xff]   ;;  %v916_v16 = vld [vmem:[%s1167_s28 + $0xa0] ss:$16 sps:$4 sm:$0xff]   ;;  %v917_v17 = vld [vmem:[%s1167_s28 + $0xa8] ss:$16 sps:$4 sm:$0xff]  }
  0x3e   : > { %v918_v18 = vld [vmem:[%s1167_s28 + $0xc4] ss:$16 sps:$4 sm:$0xff]   ;;  %v920_v19 = vld [vmem:[%s1167_s28 + $0xcc] ss:$16 sps:$4 sm:$0xff]   ;;  %v922_v20 = vld [vmem:[%s1167_s28 + $0xc0] ss:$16 sps:$4 sm:$0xff]  }
  0x3f   : > { %v923_v21 = vld [vmem:[%s1167_s28 + $0xc8] ss:$16 sps:$4 sm:$0xff]   ;;  %v924_v22 = vld [vmem:[%s1167_s28 + $0xe4] ss:$16 sps:$4 sm:$0xff]   ;;  %v926_v23 = vld [vmem:[%s1167_s28 + $0xec] ss:$16 sps:$4 sm:$0xff]  }
  0x40   : > { %629 = vmatpush1.bf16.msra.mxu0 %v898_v4  ;;  %670 = vmatpush1.bf16.msra.mxu1 %v899_v5  ;;  %v928_v24 = vld [vmem:[%s1167_s28 + $0xe0] ss:$16 sps:$4 sm:$0xff]   ;;  %v929_v25 = vld [vmem:[%s1167_s28 + $0xe8] ss:$16 sps:$4 sm:$0xff]   ;;  %v930_v26 = vld [vmem:[%s1167_s28 + $0x104] ss:$16 sps:$4 sm:$0xff]  }
  0x41   : > { %630 = vmatprep.subr.bf16.mxu0 %v900_v6  ;;  %671 = vmatprep.subr.bf16.mxu1 %v902_v7  ;;  %v932_v27 = vld [vmem:[%s1167_s28 + $0x10c] ss:$16 sps:$4 sm:$0xff]   ;;  %v934_v28 = vld [vmem:[%s1167_s28 + $0x100] ss:$16 sps:$4 sm:$0xff]   ;;  %v935_v29 = vld [vmem:[%s1167_s28 + $0x108] ss:$16 sps:$4 sm:$0xff]  }
  0x42   : > { %v936_v30 = vld [vmem:[%s1167_s28 + $0x124] ss:$16 sps:$4 sm:$0xff]   ;;  %v938_v31 = vld [vmem:[%s1167_s28 + $0x12c] ss:$16 sps:$4 sm:$0xff]   ;;  %v940_v32 = vld [vmem:[%s1167_s28 + $0x120] ss:$16 sps:$4 sm:$0xff]  }
  0x43   : > { %v941_v33 = vld [vmem:[%s1167_s28 + $0x128] ss:$16 sps:$4 sm:$0xff]   ;;  %v942_v34 = vld [vmem:[%s1167_s28 + $0x144] ss:$16 sps:$4 sm:$0xff]   ;;  %v944_v35 = vld [vmem:[%s1167_s28 + $0x14c] ss:$16 sps:$4 sm:$0xff]  }
  0x44   : > { %631 = vmatpush1.bf16.msra.mxu0 %v904_v8  ;;  %672 = vmatpush1.bf16.msra.mxu1 %v905_v9  ;;  %v946_v36 = vld [vmem:[%s1167_s28 + $0x140] ss:$16 sps:$4 sm:$0xff]   ;;  %v947_v37 = vld [vmem:[%s1167_s28 + $0x148] ss:$16 sps:$4 sm:$0xff]   ;;  %v948_v38 = vld [vmem:[%s1167_s28 + $0x164] ss:$16 sps:$4 sm:$0xff]  }
  0x45   : > { %632 = vmatprep.subr.bf16.mxu0 %v906_v10  ;;  %673 = vmatprep.subr.bf16.mxu1 %v908_v11  ;;  %v950_v39 = vld [vmem:[%s1167_s28 + $0x16c] ss:$16 sps:$4 sm:$0xff]   ;;  %v952_v40 = vld [vmem:[%s1167_s28 + $0x160] ss:$16 sps:$4 sm:$0xff]   ;;  %v953_v41 = vld [vmem:[%s1167_s28 + $0x168] ss:$16 sps:$4 sm:$0xff]  }
  0x46   : > { %v954_v42 = vld [vmem:[%s1167_s28 + $0x184] ss:$16 sps:$4 sm:$0xff]   ;;  %v956_v43 = vld [vmem:[%s1167_s28 + $0x18c] ss:$16 sps:$4 sm:$0xff]   ;;  %v958_v44 = vld [vmem:[%s1167_s28 + $0x180] ss:$16 sps:$4 sm:$0xff]  }
  0x47   : > { %v959_v45 = vld [vmem:[%s1167_s28 + $0x188] ss:$16 sps:$4 sm:$0xff]   ;;  %v960_v46 = vld [vmem:[%s1167_s28 + $0x1a4] ss:$16 sps:$4 sm:$0xff]   ;;  %v962_v47 = vld [vmem:[%s1167_s28 + $0x1ac] ss:$16 sps:$4 sm:$0xff]  }
  0x48   : > { %633 = vmatpush1.bf16.msra.mxu0 %v910_v12  ;;  %674 = vmatpush1.bf16.msra.mxu1 %v911_v13  ;;  %v964_v48 = vld [vmem:[%s1167_s28 + $0x1a0] ss:$16 sps:$4 sm:$0xff]   ;;  %v965_v49 = vld [vmem:[%s1167_s28 + $0x1a8] ss:$16 sps:$4 sm:$0xff]   ;;  %s1249_s29 = smov (!%p271_p8, %s791_s29), 7 }
  0x49   : > { %634 = vmatprep.subr.bf16.mxu0 %v912_v14  ;;  %675 = vmatprep.subr.bf16.mxu1 %v914_v15  ;;  %s792_s30 = sshll.u32 %s1249_s29, 3 }
  0x4a   : > { %s274_s5 = scalar_lea.vmem %s1244_s2, %s792_s30 }
  0x4c   : > { %635 = vmatpush1.bf16.msra.mxu0 %v916_v16  ;;  %676 = vmatpush1.bf16.msra.mxu1 %v917_v17 }
  0x4d   : > { %636 = vmatprep.subr.bf16.mxu0 %v918_v18  ;;  %677 = vmatprep.subr.bf16.mxu1 %v920_v19 }
  0x50   : > { %637 = vmatpush1.bf16.msra.mxu0 %v922_v20  ;;  %678 = vmatpush1.bf16.msra.mxu1 %v923_v21 }
  0x51   : > { %638 = vmatprep.subr.bf16.mxu0 %v924_v22  ;;  %679 = vmatprep.subr.bf16.mxu1 %v926_v23 }
  0x54   : > { %639 = vmatpush1.bf16.msra.mxu0 %v928_v24  ;;  %680 = vmatpush1.bf16.msra.mxu1 %v929_v25 }
  0x55   : > { %640 = vmatprep.subr.bf16.mxu0 %v930_v26  ;;  %681 = vmatprep.subr.bf16.mxu1 %v932_v27 }
  0x58   : > { %641 = vmatpush1.bf16.msra.mxu0 %v934_v28  ;;  %682 = vmatpush1.bf16.msra.mxu1 %v935_v29 }
  0x59   : > { %642 = vmatprep.subr.bf16.mxu0 %v936_v30  ;;  %683 = vmatprep.subr.bf16.mxu1 %v938_v31 }
  0x5c   : > { %643 = vmatpush1.bf16.msra.mxu0 %v940_v32  ;;  %684 = vmatpush1.bf16.msra.mxu1 %v941_v33 }
  0x5d   : > { %644 = vmatprep.subr.bf16.mxu0 %v942_v34  ;;  %685 = vmatprep.subr.bf16.mxu1 %v944_v35 }
  0x60   : > { %645 = vmatpush1.bf16.msra.mxu0 %v946_v36  ;;  %686 = vmatpush1.bf16.msra.mxu1 %v947_v37 }
  0x61   : > { %646 = vmatprep.subr.bf16.mxu0 %v948_v38  ;;  %687 = vmatprep.subr.bf16.mxu1 %v950_v39 }
  0x64   : > { %647 = vmatpush1.bf16.msra.mxu0 %v952_v40  ;;  %688 = vmatpush1.bf16.msra.mxu1 %v953_v41 }
  0x65   : > { %648 = vmatprep.subr.bf16.mxu0 %v954_v42  ;;  %689 = vmatprep.subr.bf16.mxu1 %v956_v43 }
  0x68   : > { %649 = vmatpush1.bf16.msra.mxu0 %v958_v44  ;;  %690 = vmatpush1.bf16.msra.mxu1 %v959_v45 }
  0x69   : > { %650 = vmatprep.subr.bf16.mxu0 %v960_v46  ;;  %691 = vmatprep.subr.bf16.mxu1 %v962_v47 }
  0x6c   : > { %651 = vmatpush1.bf16.msra.mxu0 %v964_v48  ;;  %692 = vmatpush1.bf16.msra.mxu1 %v965_v49 }
  0x6f   : > { %657 = vmatmul.mubr.bf16.vlgmr.msra.gmra.mrb[0].mxu0 %v793_v50  ;;  %698 = vmatmul.mubr.bf16.vlgmr.msra.gmra.mrb[0].mxu1 %v793_v50 }
 0x142   : > { %v658_v51 = vpop.f32.mrb[0].mxu0  ;;  %v699_v52 = vpop.f32.mrb[0].mxu1 }
 0x143   : > { %vm706_vm1 = vcmp.ge.f32.partialorder %v658_v51, 0.0  ;;  %v710_v53 = vmul.f32 0.1, %v658_v51  ;;  %v712_v54 = vmul.f32 0.1, %v699_v52  ;;  %v660_v55 = vpop.f32.mrb[1].mxu0 }
 0x144   : > { %v701_v56 = vpop.f32.mrb[1].mxu1  ;;  %vm708_vm2 = vcmp.ge.f32.partialorder %v699_v52, 0.0  ;;  %vm707_vm3 = vcmp.ge.f32.partialorder %v660_v55, 0.0  ;;  %v711_v58 = vmul.f32 0.1, %v660_v55  ;;  %v662_v59 = vpop.f32.mrb[2].mxu0 }
 0x145   : > { %v714_v57 = vsel %vm706_vm1, %v658_v51, %v710_v53  ;;  %v703_v60 = vpop.f32.mrb[2].mxu1  ;;  %vm709_vm4 = vcmp.ge.f32.partialorder %v701_v56, 0.0  ;;  %v713_v61 = vmul.f32 0.1, %v701_v56  ;;  %v663_v62 = vpop.f32.mrb[3].mxu0  ;;  %v716_v1 = vsel %vm708_vm2, %v699_v52, %v712_v54 }
 0x146   : > { %718 = vst [vmem:[%s274_s5] sm:$0xff] %v714_v57  ;;  %v704_v63 = vpop.f32.mrb[3].mxu1  ;;  %v715_v0 = vsel %vm707_vm3, %v660_v55, %v711_v58  ;;  %720 = vst [vmem:[%s274_s5 + $0x10] sm:$0xff] %v716_v1 }
 0x147   : > { %719 = vst [vmem:[%s274_s5 + $0x8] sm:$0xff] %v715_v0  ;;  %v717_v2 = vsel %vm709_vm4, %v701_v56, %v713_v61 }
 0x148   : > { %721 = vst [vmem:[%s274_s5 + $0x18] sm:$0xff] %v717_v2 }
 0x149 PF: > { %p9_p9 = scmp.ge.s32.totalorder %s1024_s13, 4   ;;  %s1245_s9 = smov %s986_s10 }
 0x14a   : > { %s1246_s10 = smov %s1033_s16  ;;  %s1247_s11 = smov %s1024_s13 }
 0x14b   :  { %11 = sbr.rel (!%p9_p9) target bundleno = 2 (0x2), region = 86 }

// kernel: forward.39
= control target key start
LH: loop header
LB: loop body
LE: loop exit
PB: predicated region body
PF: predicated region fallthrough
CT: control target
= control target key end

     0   :  { %v505_v0 = vmov 0   ;;  %vm299_vm0 = vcmask 785408   ;;  %s673_s1 = inlined_call_operand.vmem [shape: bf16[224,384], index: 1, kind: input, shape index: {}]   ;;  %s674_s0 = inlined_call_operand.vmem [shape: bf16[8,224], index: 0, kind: input, shape index: {}]   ;;  %s675_s2 = inlined_call_operand.vmem [shape: f32[8,384], index: 2, kind: output, shape index: {}]  }
   0x1   :  { %344 = vmatprep.subr.bf16.mxu1 %v505_v0  ;;  %v447_v1 = vld [vmem:[%s673_s1 + $0x4] ss:$12 sps:$4 sm:$0xff]   ;;  %v449_v2 = vld [vmem:[%s673_s1 + $0x8] ss:$12 sps:$4 sm:$0xff]   ;;  %v450_v3 = vld [vmem:[%s673_s1] ss:$12 sps:$4 sm:$0xff]  }
   0x2   :  { %303 = vmatprep.subr.bf16.mxu0 %v447_v1  ;;  %345 = vmatpush1.bf16.msra.mxu1 %v449_v2  ;;  %v451_v4 = vld [vmem:[%s673_s1 + $0x1c] ss:$12 sps:$4 sm:$0xff]   ;;  %v453_v5 = vld [vmem:[%s673_s1 + $0x20] ss:$12 sps:$4 sm:$0xff]   ;;  %v454_v6 = vld [vmem:[%s673_s1 + $0x18] ss:$12 sps:$4 sm:$0xff]  }
   0x3   :  { %304 = vmatpush1.bf16.msra.mxu0 %v450_v3  ;;  %346 = vmatprep.subr.bf16.mxu1 %v505_v0  ;;  %v455_v7 = vld [vmem:[%s673_s1 + $0x34] ss:$12 sps:$4 sm:$0xff]   ;;  %v457_v8 = vld [vmem:[%s673_s1 + $0x38] ss:$12 sps:$4 sm:$0xff]   ;;  %v458_v9 = vld [vmem:[%s673_s1 + $0x30] ss:$12 sps:$4 sm:$0xff]  }
   0x4   :  { %305 = vmatprep.subr.bf16.mxu0 %v451_v4  ;;  %v459_v10 = vld [vmem:[%s673_s1 + $0x4c] ss:$12 sps:$4 sm:$0xff]   ;;  %v461_v11 = vld [vmem:[%s673_s1 + $0x50] ss:$12 sps:$4 sm:$0xff]   ;;  %v462_v12 = vld [vmem:[%s673_s1 + $0x48] ss:$12 sps:$4 sm:$0xff]  }
   0x5   :  { %v463_v13 = vld [vmem:[%s673_s1 + $0x64] ss:$12 sps:$4 sm:$0xff]   ;;  %v465_v14 = vld [vmem:[%s673_s1 + $0x68] ss:$12 sps:$4 sm:$0xff]   ;;  %v466_v15 = vld [vmem:[%s673_s1 + $0x60] ss:$12 sps:$4 sm:$0xff]  }
   0x6   :  { %347 = vmatpush1.bf16.msra.mxu1 %v453_v5  ;;  %v467_v16 = vld [vmem:[%s673_s1 + $0x7c] ss:$12 sps:$4 sm:$0xff]   ;;  %v469_v17 = vld [vmem:[%s673_s1 + $0x80] ss:$12 sps:$4 sm:$0xff]   ;;  %v470_v18 = vld [vmem:[%s673_s1 + $0x78] ss:$12 sps:$4 sm:$0xff]  }
   0x7   :  { %306 = vmatpush1.bf16.msra.mxu0 %v454_v6  ;;  %348 = vmatprep.subr.bf16.mxu1 %v505_v0  ;;  %v471_v19 = vld [vmem:[%s673_s1 + $0x94] ss:$12 sps:$4 sm:$0xff]   ;;  %v473_v20 = vld [vmem:[%s673_s1 + $0x98] ss:$12 sps:$4 sm:$0xff]   ;;  %v474_v21 = vld [vmem:[%s673_s1 + $0x90] ss:$12 sps:$4 sm:$0xff]  }
   0x8   :  { %307 = vmatprep.subr.bf16.mxu0 %v455_v7  ;;  %v475_v22 = vld [vmem:[%s673_s1 + $0xac] ss:$12 sps:$4 sm:$0xff]   ;;  %v477_v23 = vld [vmem:[%s673_s1 + $0xb0] ss:$12 sps:$4 sm:$0xff]   ;;  %v478_v24 = vld [vmem:[%s673_s1 + $0xa8] ss:$12 sps:$4 sm:$0xff]  }
   0x9   :  { %v479_v25 = vld [vmem:[%s673_s1 + $0xc4] ss:$12 sps:$4 sm:$0xff]   ;;  %v481_v26 = vld [vmem:[%s673_s1 + $0xc8] ss:$12 sps:$4 sm:$0xff]   ;;  %v482_v27 = vld [vmem:[%s673_s1 + $0xc0] ss:$12 sps:$4 sm:$0xff]  }
   0xa   :  { %349 = vmatpush1.bf16.msra.mxu1 %v457_v8  ;;  %v12_v28 = vld [vmem:[%s674_s0] sm:$0xff]  ;;  %v483_v29 = vld [vmem:[%s673_s1 + $0xdc] ss:$12 sps:$4 sm:$0xff]   ;;  %v491_v36 = vld [vmem:[%s673_s1 + $0x10c] ss:$12 sps:$4 sm:$0xff]  }
   0xb   :  { %308 = vmatpush1.bf16.msra.mxu0 %v458_v9  ;;  %350 = vmatprep.subr.bf16.mxu1 %v505_v0  ;;  %v401_v30 = vcombine.high %v12_v28, %v12_v28  ;;  %v485_v31 = vld [vmem:[%s673_s1 + $0xe0] ss:$12 sps:$4 sm:$0xff]   ;;  %v486_v32 = vld [vmem:[%s673_s1 + $0xd8] ss:$12 sps:$4 sm:$0xff]   ;;  %v490_v35 = vld [vmem:[%s673_s1 + $0xf0] ss:$12 sps:$4 sm:$0xff]   ;;  %v400_v45 = vcombine.low %v12_v28, %v12_v28 }
   0xc   :  { %309 = vmatprep.subr.bf16.mxu0 %v459_v10  ;;  %v487_v33 = vld [vmem:[%s673_s1 + $0xf4] ss:$12 sps:$4 sm:$0xff]   ;;  %v489_v34 = vld [vmem:[%s673_s1 + $0xf8] ss:$12 sps:$4 sm:$0xff]   ;;  %v493_v37 = vld [vmem:[%s673_s1 + $0x110] ss:$12 sps:$4 sm:$0xff]  }
   0xd   :  { %445 = vmatprep.mubr.msk.bf16.mxu1 %vm299_vm0, %v401_v30  ;;  %444 = vmatprep.mubr.msk.bf16.mxu0 %vm299_vm0, %v401_v30  ;;  %v494_v38 = vld [vmem:[%s673_s1 + $0x108] ss:$12 sps:$4 sm:$0xff]   ;;  %v495_v39 = vld [vmem:[%s673_s1 + $0x124] ss:$12 sps:$4 sm:$0xff]   ;;  %v498_v41 = vld [vmem:[%s673_s1 + $0x120] ss:$12 sps:$4 sm:$0xff]  }
   0xe   :  { %351 = vmatpush1.bf16.msra.mxu1 %v461_v11  ;;  %v497_v40 = vld [vmem:[%s673_s1 + $0x128] ss:$12 sps:$4 sm:$0xff]   ;;  %v501_v43 = vld [vmem:[%s673_s1 + $0x140] ss:$12 sps:$4 sm:$0xff]   ;;  %v502_v44 = vld [vmem:[%s673_s1 + $0x138] ss:$12 sps:$4 sm:$0xff]  }
   0xf   :  { %310 = vmatpush1.bf16.msra.mxu0 %v462_v12  ;;  %352 = vmatprep.subr.bf16.mxu1 %v505_v0  ;;  %v499_v42 = vld [vmem:[%s673_s1 + $0x13c] ss:$12 sps:$4 sm:$0xff]  }
  0x10   :  { %311 = vmatprep.subr.bf16.mxu0 %v463_v13 }
  0x12   :  { %353 = vmatpush1.bf16.msra.mxu1 %v465_v14 }
  0x13   :  { %312 = vmatpush1.bf16.msra.mxu0 %v466_v15  ;;  %354 = vmatprep.subr.bf16.mxu1 %v505_v0 }
  0x14   :  { %313 = vmatprep.subr.bf16.mxu0 %v467_v16 }
  0x16   :  { %355 = vmatpush1.bf16.msra.mxu1 %v469_v17 }
  0x17   :  { %314 = vmatpush1.bf16.msra.mxu0 %v470_v18  ;;  %356 = vmatprep.subr.bf16.mxu1 %v505_v0 }
  0x18   :  { %315 = vmatprep.subr.bf16.mxu0 %v471_v19 }
  0x1a   :  { %357 = vmatpush1.bf16.msra.mxu1 %v473_v20 }
  0x1b   :  { %316 = vmatpush1.bf16.msra.mxu0 %v474_v21  ;;  %358 = vmatprep.subr.bf16.mxu1 %v505_v0 }
  0x1c   :  { %317 = vmatprep.subr.bf16.mxu0 %v475_v22 }
  0x1e   :  { %359 = vmatpush1.bf16.msra.mxu1 %v477_v23 }
  0x1f   :  { %318 = vmatpush1.bf16.msra.mxu0 %v478_v24  ;;  %360 = vmatprep.subr.bf16.mxu1 %v505_v0 }
  0x20   :  { %319 = vmatprep.subr.bf16.mxu0 %v479_v25 }
  0x22   :  { %361 = vmatpush1.bf16.msra.mxu1 %v481_v26 }
  0x23   :  { %320 = vmatpush1.bf16.msra.mxu0 %v482_v27  ;;  %362 = vmatprep.subr.bf16.mxu1 %v505_v0 }
  0x24   :  { %321 = vmatprep.subr.bf16.mxu0 %v483_v29 }
  0x26   :  { %363 = vmatpush1.bf16.msra.mxu1 %v485_v31 }
  0x27   :  { %322 = vmatpush1.bf16.msra.mxu0 %v486_v32  ;;  %364 = vmatprep.subr.bf16.mxu1 %v505_v0 }
  0x28   :  { %323 = vmatprep.subr.bf16.mxu0 %v487_v33 }
  0x2a   :  { %365 = vmatpush1.bf16.msra.mxu1 %v489_v34 }
  0x2b   :  { %324 = vmatpush1.bf16.msra.mxu0 %v490_v35  ;;  %366 = vmatprep.subr.bf16.mxu1 %v505_v0 }
  0x2c   :  { %325 = vmatprep.subr.bf16.mxu0 %v491_v36 }
  0x2e   :  { %367 = vmatpush1.bf16.msra.mxu1 %v493_v37 }
  0x2f   :  { %326 = vmatpush1.bf16.msra.mxu0 %v494_v38  ;;  %368 = vmatprep.subr.bf16.mxu1 %v505_v0 }
  0x30   :  { %327 = vmatprep.subr.bf16.mxu0 %v495_v39 }
  0x32   :  { %369 = vmatpush1.bf16.msra.mxu1 %v497_v40 }
  0x33   :  { %328 = vmatpush1.bf16.msra.mxu0 %v498_v41  ;;  %370 = vmatprep.subr.bf16.mxu1 %v505_v0 }
  0x34   :  { %329 = vmatprep.subr.bf16.mxu0 %v499_v42 }
  0x36   :  { %371 = vmatpush1.bf16.msra.mxu1 %v501_v43 }
  0x37   :  { %330 = vmatpush1.bf16.msra.mxu0 %v502_v44 }
  0x39   :  { %377 = vmatmul.mubr.bf16.vlgmr.msra.gmra.mrb[0].mxu1 %v400_v45 }
  0x3a   :  { %336 = vmatmul.mubr.bf16.vlgmr.msra.gmra.mrb[0].mxu0 %v400_v45 }
 0x10c   :  { %v378_v46 = vpop.f32.mrb[0].mxu1 }
 0x10d   :  { %vm386_vm1 = vcmp.ge.f32.partialorder %v378_v46, 0.0  ;;  %v389_v47 = vmul.f32 0.1, %v378_v46  ;;  %v337_v48 = vpop.f32.mrb[0].mxu0  ;;  %v380_v49 = vpop.f32.mrb[1].mxu1 }
 0x10e   :  { %vm384_vm2 = vcmp.ge.f32.partialorder %v337_v48, 0.0  ;;  %v387_v50 = vmul.f32 0.1, %v337_v48  ;;  %v339_v51 = vpop.f32.mrb[1].mxu0  ;;  %v381_v52 = vpop.f32.mrb[2].mxu1 }
 0x10f   :  { %v392_v53 = vsel %vm386_vm1, %v378_v46, %v389_v47  ;;  %vm385_vm3 = vcmp.ge.f32.partialorder %v339_v51, 0.0  ;;  %v388_v54 = vmul.f32 0.1, %v339_v51  ;;  %v341_v55 = vpop.f32.mrb[2].mxu0  ;;  %v382_v56 = vpop.f32.mrb[3].mxu1 }
 0x110   :  { %395 = vst [vmem:[%s675_s2 + $0x10] sm:$0xff] %v392_v53  ;;  %v390_v57 = vsel %vm384_vm2, %v337_v48, %v387_v50  ;;  %v342_v58 = vpop.f32.mrb[3].mxu0 }
 0x111   :  { %393 = vst [vmem:[%s675_s2] sm:$0xff] %v390_v57  ;;  %v391_v59 = vsel %vm385_vm3, %v339_v51, %v388_v54 }
 0x112   :  { %394 = vst [vmem:[%s675_s2 + $0x8] sm:$0xff] %v391_v59 }

// kernel: forward.40
= control target key start
LH: loop header
LB: loop body
LE: loop exit
PB: predicated region body
PF: predicated region fallthrough
CT: control target
= control target key end

     0   :  { %v274_v0 = vmov 0.0   ;;  %vm275_vm0 = vmmov 0   ;;  %v276_v3 = vmov 0   ;;  %vm113_vm1 = vcmask 654336   ;;  %s349_s1 = inlined_call_operand.vmem [shape: bf16[80,384], index: 1, kind: input, shape index: {}]   ;;  %s350_s0 = inlined_call_operand.vmem [shape: bf16[8,80], index: 0, kind: input, shape index: {}]   ;;  %s351_s2 = inlined_call_operand.vmem [shape: f32[8,384], index: 2, kind: output, shape index: {}]  }
   0x1   :  { %237 = vmatprep.subr.bf16.mxu1 %v274_v0  ;;  %v254_v1 = vld [vmem:[%s349_s1 + $0x4] ss:$12 sps:$4 sm:$0xff]   ;;  %247 = vmatprep.mubr.msk.bf16.mxu1 %vm275_vm0, %v274_v0  ;;  %v256_v2 = vld [vmem:[%s349_s1 + $0x8] ss:$12 sps:$4 sm:$0xff]   ;;  %v257_v4 = vld [vmem:[%s349_s1] ss:$12 sps:$4 sm:$0xff]  }
   0x2   :  { %149 = vmatprep.mubr.bf16.mxu0 %v276_v3  ;;  %117 = vmatprep.subr.bf16.mxu0 %v254_v1  ;;  %v258_v5 = vld [vmem:[%s349_s1 + $0x1c] ss:$12 sps:$4 sm:$0xff]   ;;  %v260_v6 = vld [vmem:[%s349_s1 + $0x20] ss:$12 sps:$4 sm:$0xff]   ;;  %v261_v7 = vld [vmem:[%s349_s1 + $0x18] ss:$12 sps:$4 sm:$0xff]  }
   0x3   :  { %238 = vmatpush3.bf16.msra.mxu1 %v256_v2  ;;  %118 = vmatpush1.bf16.msra.mxu0 %v257_v4  ;;  %v262_v8 = vld [vmem:[%s349_s1 + $0x34] ss:$12 sps:$4 sm:$0xff]   ;;  %v264_v9 = vld [vmem:[%s349_s1 + $0x38] ss:$12 sps:$4 sm:$0xff]   ;;  %v265_v10 = vld [vmem:[%s349_s1 + $0x30] ss:$12 sps:$4 sm:$0xff]  }
   0x4   :  { %239 = vmatprep.subr.bf16.mxu1 %v274_v0  ;;  %119 = vmatprep.subr.bf16.mxu0 %v258_v5  ;;  %v266_v11 = vld [vmem:[%s349_s1 + $0x4c] ss:$12 sps:$4 sm:$0xff]   ;;  %v268_v12 = vld [vmem:[%s349_s1 + $0x50] ss:$12 sps:$4 sm:$0xff]   ;;  %v269_v13 = vld [vmem:[%s349_s1 + $0x48] ss:$12 sps:$4 sm:$0xff]  }
   0x5   :  { %v270_v14 = vld [vmem:[%s349_s1 + $0x64] ss:$12 sps:$4 sm:$0xff]   ;;  %v272_v15 = vld [vmem:[%s349_s1 + $0x68] ss:$12 sps:$4 sm:$0xff]   ;;  %v273_v16 = vld [vmem:[%s349_s1 + $0x60] ss:$12 sps:$4 sm:$0xff]  }
   0x6   :  { %v12_v17 = vld [vmem:[%s350_s0] sm:$0xf] }
   0x7   :  { %240 = vmatpush3.bf16.msra.mxu1 %v260_v6  ;;  %120 = vmatpush1.bf16.msra.mxu0 %v261_v7 }
   0x8   :  { %241 = vmatprep.subr.bf16.mxu1 %v274_v0  ;;  %121 = vmatprep.subr.bf16.mxu0 %v262_v8 }
   0xb   :  { %242 = vmatpush3.bf16.msra.mxu1 %v264_v9  ;;  %122 = vmatpush1.bf16.msra.mxu0 %v265_v10 }
   0xc   :  { %243 = vmatprep.subr.bf16.mxu1 %v274_v0  ;;  %123 = vmatprep.subr.bf16.mxu0 %v266_v11 }
   0xf   :  { %244 = vmatpush3.bf16.msra.mxu1 %v268_v12  ;;  %124 = vmatpush1.bf16.msra.mxu0 %v269_v13 }
  0x10   :  { %245 = vmatprep.subr.bf16.mxu1 %v274_v0  ;;  %125 = vmatprep.subr.bf16.mxu0 %v270_v14 }
  0x13   :  { %246 = vmatpush3.bf16.msra.mxu1 %v272_v15  ;;  %126 = vmatpush1.bf16.msra.mxu0 %v273_v16 }
  0x16   :  { %248 = vmatmul.mubr.msk.bf16.vlgmr.msra.gmra.mrb[0].mxu1 %vm113_vm1, %v12_v17  ;;  %229 = vmatmul.mubr.msk.bf16.vlgmr.msra.gmra.mrb[0].mxu0 %vm113_vm1, %v12_v17 }
  0xe9   :  { %v192_v18 = vpop.f32.mrb[0].mxu1  ;;  %v151_v20 = vpop.f32.mrb[0].mxu0 }
  0xea   :  { %vm200_vm2 = vcmp.ge.f32.partialorder %v192_v18, 0.0  ;;  %v203_v19 = vmul.f32 0.1, %v192_v18  ;;  %v249_v21 = vpop.f32.mrb[1].mxu1  ;;  %vm198_vm3 = vcmp.ge.f32.partialorder %v151_v20, 0.0  ;;  %v153_v23 = vpop.f32.mrb[1].mxu0 }
  0xeb   :  { %v201_v22 = vmul.f32 0.1, %v151_v20  ;;  %v195_v24 = vpop.f32.mrb[2].mxu1  ;;  %vm199_vm4 = vcmp.ge.f32.partialorder %v153_v23, 0.0  ;;  %v202_v26 = vmul.f32 0.1, %v153_v23 }
  0xec   :  { %v206_v25 = vsel %vm200_vm2, %v192_v18, %v203_v19  ;;  %v155_v27 = vpop.f32.mrb[2].mxu0  ;;  %v250_v28 = vpop.f32.mrb[3].mxu1 }
  0xed   :  { %209 = vst [vmem:[%s351_s2 + $0x10] sm:$0xff] %v206_v25  ;;  %v204_v29 = vsel %vm198_vm3, %v151_v20, %v201_v22  ;;  %v156_v30 = vpop.f32.mrb[3].mxu0  ;;  %v205_v31 = vsel %vm199_vm4, %v153_v23, %v202_v26 }
  0xee   :  { %207 = vst [vmem:[%s351_s2] sm:$0xff] %v204_v29  ;;  %208 = vst [vmem:[%s351_s2 + $0x8] sm:$0xff] %v205_v31 }

// kernel: forward.41
= control target key start
LH: loop header
LB: loop body
LE: loop exit
PB: predicated region body
PF: predicated region fallthrough
CT: control target
= control target key end

     0   :  { %v265_v0 = vmov 0.0   ;;  %vm266_vm0 = vmmov 0   ;;  %v267_v3 = vmov 0   ;;  %vm113_vm1 = vcmask 654336   ;;  %s340_s1 = inlined_call_operand.vmem [shape: bf16[80,384], index: 1, kind: input, shape index: {}]   ;;  %s341_s0 = inlined_call_operand.vmem [shape: bf16[8,80], index: 0, kind: input, shape index: {}]   ;;  %s342_s2 = inlined_call_operand.vmem [shape: f32[8,384], index: 2, kind: output, shape index: {}]  }
   0x1   :  { %228 = vmatprep.subr.bf16.mxu1 %v265_v0  ;;  %v245_v1 = vld [vmem:[%s340_s1 + $0x4] ss:$12 sps:$4 sm:$0xff]   ;;  %238 = vmatprep.mubr.msk.bf16.mxu1 %vm266_vm0, %v265_v0  ;;  %v247_v2 = vld [vmem:[%s340_s1 + $0x8] ss:$12 sps:$4 sm:$0xff]   ;;  %v248_v4 = vld [vmem:[%s340_s1] ss:$12 sps:$4 sm:$0xff]  }
   0x2   :  { %149 = vmatprep.mubr.bf16.mxu0 %v267_v3  ;;  %117 = vmatprep.subr.bf16.mxu0 %v245_v1  ;;  %v249_v5 = vld [vmem:[%s340_s1 + $0x1c] ss:$12 sps:$4 sm:$0xff]   ;;  %v251_v6 = vld [vmem:[%s340_s1 + $0x20] ss:$12 sps:$4 sm:$0xff]   ;;  %v252_v7 = vld [vmem:[%s340_s1 + $0x18] ss:$12 sps:$4 sm:$0xff]  }
   0x3   :  { %229 = vmatpush3.bf16.msra.mxu1 %v247_v2  ;;  %118 = vmatpush1.bf16.msra.mxu0 %v248_v4  ;;  %v253_v8 = vld [vmem:[%s340_s1 + $0x34] ss:$12 sps:$4 sm:$0xff]   ;;  %v255_v9 = vld [vmem:[%s340_s1 + $0x38] ss:$12 sps:$4 sm:$0xff]   ;;  %v256_v10 = vld [vmem:[%s340_s1 + $0x30] ss:$12 sps:$4 sm:$0xff]  }
   0x4   :  { %230 = vmatprep.subr.bf16.mxu1 %v265_v0  ;;  %119 = vmatprep.subr.bf16.mxu0 %v249_v5  ;;  %v257_v11 = vld [vmem:[%s340_s1 + $0x4c] ss:$12 sps:$4 sm:$0xff]   ;;  %v259_v12 = vld [vmem:[%s340_s1 + $0x50] ss:$12 sps:$4 sm:$0xff]   ;;  %v260_v13 = vld [vmem:[%s340_s1 + $0x48] ss:$12 sps:$4 sm:$0xff]  }
   0x5   :  { %v261_v14 = vld [vmem:[%s340_s1 + $0x64] ss:$12 sps:$4 sm:$0xff]   ;;  %v263_v15 = vld [vmem:[%s340_s1 + $0x68] ss:$12 sps:$4 sm:$0xff]   ;;  %v264_v16 = vld [vmem:[%s340_s1 + $0x60] ss:$12 sps:$4 sm:$0xff]  }
   0x6   :  { %v12_v17 = vld [vmem:[%s341_s0] sm:$0xf] }
   0x7   :  { %231 = vmatpush3.bf16.msra.mxu1 %v251_v6  ;;  %120 = vmatpush1.bf16.msra.mxu0 %v252_v7 }
   0x8   :  { %232 = vmatprep.subr.bf16.mxu1 %v265_v0  ;;  %121 = vmatprep.subr.bf16.mxu0 %v253_v8 }
   0xb   :  { %233 = vmatpush3.bf16.msra.mxu1 %v255_v9  ;;  %122 = vmatpush1.bf16.msra.mxu0 %v256_v10 }
   0xc   :  { %234 = vmatprep.subr.bf16.mxu1 %v265_v0  ;;  %123 = vmatprep.subr.bf16.mxu0 %v257_v11 }
   0xf   :  { %235 = vmatpush3.bf16.msra.mxu1 %v259_v12  ;;  %124 = vmatpush1.bf16.msra.mxu0 %v260_v13 }
  0x10   :  { %236 = vmatprep.subr.bf16.mxu1 %v265_v0  ;;  %125 = vmatprep.subr.bf16.mxu0 %v261_v14 }
  0x13   :  { %237 = vmatpush3.bf16.msra.mxu1 %v263_v15  ;;  %126 = vmatpush1.bf16.msra.mxu0 %v264_v16 }
  0x16   :  { %239 = vmatmul.mubr.msk.bf16.vlgmr.msra.gmra.mrb[0].mxu1 %vm113_vm1, %v12_v17  ;;  %220 = vmatmul.mubr.msk.bf16.vlgmr.msra.gmra.mrb[0].mxu0 %vm113_vm1, %v12_v17 }
  0xe9   :  { %v192_v18 = vpop.f32.mrb[0].mxu1  ;;  %v151_v19 = vpop.f32.mrb[0].mxu0 }
  0xea   :  { %200 = vst [vmem:[%s342_s2 + $0x10] sm:$0xff] %v192_v18  ;;  %v240_v20 = vpop.f32.mrb[1].mxu1  ;;  %198 = vst [vmem:[%s342_s2] sm:$0xff] %v151_v19  ;;  %v153_v21 = vpop.f32.mrb[1].mxu0 }
  0xeb   :  { %v195_v22 = vpop.f32.mrb[2].mxu1  ;;  %199 = vst [vmem:[%s342_s2 + $0x8] sm:$0xff] %v153_v21  ;;  %v155_v23 = vpop.f32.mrb[2].mxu0 }
  0xec   :  { %v241_v24 = vpop.f32.mrb[3].mxu1  ;;  %v156_v25 = vpop.f32.mrb[3].mxu0 }

</bundles_post_ra>
